<compile_context>
chip_gen: v6e
topology: v6e:2x2x1
jax: 0.10.0
libtpu: 0.0.40
codegen_flags: <defaults>
</compile_context>

<pallas_src>
import functools

import jax
import jax.numpy as jnp
from jax.experimental import pallas as pl
from jax.experimental.pallas import tpu as pltpu


# ----------------------------------------------------------------------------
# Glue: temporal shift (pure index manipulation, kept in plain JAX, fused by
# the surrounding jit).  As in the PyTorch module, the shortcut also sees the
# shifted features.
# ----------------------------------------------------------------------------
def temporal_shift(x, fold_div: int = 8):
    """x: [B, N, C, H, W] -> same shape (1/8 channels shift left, 1/8 right)."""
    B, N, C, H, W = x.shape
    if N == 1:
        return x
    fold = C // fold_div
    out = x
    out = out.at[:, 1:, :fold].set(x[:, :-1, :fold])
    out = out.at[:, :-1, fold:2 * fold].set(x[:, 1:, fold:2 * fold])
    return out


def _round_up(v: int, m: int) -> int:
    return ((v + m - 1) // m) * m


# ----------------------------------------------------------------------------
# Pallas kernel: full residual block for a tile of TB images, merged along the
# lane axis.
#
# Input block layout (CP, Lbi): lanes [G, G + TB*Pf) hold the TB flattened,
# zero-padded frames back to back (Pf = (H+2)*(W+2)); G = (W+2)+1 guard lanes
# on the left and zero padding on the right keep every 3x3 tap slice in
# bounds.  For an INTERIOR output position, every tap stays inside its own
# image's padded frame, so no cross-image bleed reaches a kept output; border
# and pad lanes produce garbage that the wrapper discards.
# ----------------------------------------------------------------------------
def residual_block_kernel(*refs, offsets, guard, scratch_guard, has_downsample):
    if has_downsample:
        (x_ref, mask_ref, w1_ref, s1_ref, b1_ref, w2_ref, s2_ref, b2_ref,
         wd_ref, sd_ref, bd_ref, out_ref, y1s_ref) = refs
    else:
        (x_ref, mask_ref, w1_ref, s1_ref, b1_ref, w2_ref, s2_ref, b2_ref,
         out_ref, y1s_ref) = refs
        wd_ref = sd_ref = bd_ref = None

    OP, Lout = out_ref.shape[1], out_ref.shape[2]
    G, GS = guard, scratch_guard
    Ls = y1s_ref.shape[1]

    mask = mask_ref[...]                                        # (1, Lout) f32

    # ---- conv1 (3x3, pad 1) + BN1 + ReLU : one K = 9*Cin matmul ------------
    # bf16 tap slices for ALL TB images of this grid step at once.
    taps1 = [x_ref[0, :, G + d:G + d + Lout] for d in offsets]  # 9 x (CP, Lout)
    x9 = jnp.concatenate(taps1, axis=0)                         # (9*CP, Lout) bf16
    acc1 = jnp.dot(w1_ref[...], x9, preferred_element_type=jnp.float32)
    # scale/bias broadcast and interior mask applied once per grid step.
    y1 = jnp.maximum(acc1 * s1_ref[...] + b1_ref[...], 0.0) * mask

    # ---- stage y1 (bf16, 128-lane-aligned main store) for conv2's taps -----
    y1s_ref[:, :GS] = jnp.zeros((OP, GS), jnp.bfloat16)
    y1s_ref[:, GS + Lout:] = jnp.zeros((OP, Ls - GS - Lout), jnp.bfloat16)
    y1s_ref[:, GS:GS + Lout] = y1.astype(jnp.bfloat16)

    # ---- conv2 (3x3, pad 1) + BN2 : one K = 9*Cout matmul ------------------
    taps2 = [y1s_ref[:, GS + d:GS + d + Lout] for d in offsets]  # 9 x (OP, Lout)
    y9 = jnp.concatenate(taps2, axis=0)                          # (9*OP, Lout) bf16
    acc2 = jnp.dot(w2_ref[...], y9, preferred_element_type=jnp.float32)
    y2 = acc2 * s2_ref[...] + b2_ref[...]

    # ---- identity / downsample (1x1 conv + BN) ------------------------------
    x_c = taps1[len(offsets) // 2]                               # d = 0 center tap
    if has_downsample:
        iden = (jnp.dot(wd_ref[...], x_c, preferred_element_type=jnp.float32)
                * sd_ref[...] + bd_ref[...])
    else:
        iden = x_c.astype(jnp.float32)                           # Cin == Cout

    out_ref[0] = jnp.maximum(y2 + iden, 0.0).astype(out_ref.dtype)


# ----------------------------------------------------------------------------
# Wrapper
# ----------------------------------------------------------------------------
def _pick_image_tile(bn: int, max_tb: int = 8) -> int:
    """Largest divisor of bn (<= max_tb) keeping the grid deep enough for
    pipelining: >= 4 steps when possible (>= 2 per TensorCore on v7x),
    otherwise >= 2, otherwise whatever bn allows."""
    for min_steps in (4, 2, 1):
        cands = [tb for tb in range(1, min(max_tb, bn) + 1)
                 if bn % tb == 0 and bn // tb >= min_steps]
        if cands:
            return max(cands)
    return 1


@functools.partial(jax.jit, static_argnames=("use_tsm", "stride"))
def residual_block_2d(x, params, *, use_tsm=True, stride=1):
    """x: [B, N, C, H, W] (PyTorch layout) -> [B, N, C_out, H, W] (float32)."""
    assert stride == 1, "stride > 1 not implemented"  # TODO(synk)
    if use_tsm:
        x = temporal_shift(x)

    B, N, C, H, W = x.shape
    Cout = params["w1"].shape[-1]
    has_ds = params["wd"] is not None
    if not has_ds:
        assert C == Cout, "identity shortcut requires c_in == c_out"

    Hp, Wp = H + 2, W + 2
    Pf = Hp * Wp                          # flattened padded frame per image
    G = Wp + 1                            # max |tap lane offset|
    GS = 128                              # scratch guard (128-aligned y1 store)
    BN = B * N
    TB = _pick_image_tile(BN)
    NB = BN // TB
    Lc = TB * Pf                          # real frame lanes per grid step
    Lout = _round_up(Lc, 128)             # lane-dense output block width
    Lbi = _round_up(Lout + 2 * G, 128)    # input block width (with tap guards)
    Ls = Lout + 2 * GS                    # conv1->conv2 staging scratch width

    # Channel padding to the bf16 sublane tile so sublane concats are aligned.
    CP = _round_up(C, 16)
    OP = _round_up(Cout, 16)

    # ---- pack activations: bf16 ship, channel pad, zero-pad frame, pack TB
    # ---- images per lane block, add tap guard lanes.  All fused in this jit;
    # ---- no NCHW<->NHWC transpose anywhere.
    xb = x.reshape(BN, C, H, W).astype(jnp.bfloat16)
    xb = jnp.pad(xb, ((0, 0), (0, CP - C), (1, 1), (1, 1)))      # (BN,CP,Hp,Wp)
    xf = xb.reshape(BN, CP, Pf)
    xg = (xf.reshape(NB, TB, CP, Pf).transpose(0, 2, 1, 3)
            .reshape(NB, CP, Lc))
    xe = jnp.pad(xg, ((0, 0), (0, 0), (G, Lbi - G - Lc)))        # (NB,CP,Lbi)

    # Interior mask of the packed frames (re-establishes conv1's zero pad ring
    # before its output feeds conv2's taps).  Same for every grid step.
    r = jnp.arange(Hp)[:, None]
    c = jnp.arange(Wp)[None, :]
    m_img = ((r >= 1) & (r <= H) & (c >= 1) & (c <= W)).astype(jnp.float32)
    mask = jnp.tile(m_img.reshape(1, Pf), (1, TB))
    mask = jnp.pad(mask, ((0, 0), (0, Lout - Lc)))               # (1, Lout)

    # ---- weights / folded-BN params: (OP, 9*CP) etc., K ordered (kh,kw,cin),
    # ---- zero-padded channels, bf16.
    w1p = jnp.pad(params["w1"], ((0, 0), (0, 0), (0, CP - C), (0, OP - Cout)))
    w2p = jnp.pad(params["w2"], ((0, 0), (0, 0), (0, OP - Cout), (0, OP - Cout)))
    w1_r = jnp.transpose(w1p, (3, 0, 1, 2)).reshape(OP, 9 * CP).astype(jnp.bfloat16)
    w2_r = jnp.transpose(w2p, (3, 0, 1, 2)).reshape(OP, 9 * OP).astype(jnp.bfloat16)

    def colvec(v):  # per-channel scale/bias -> (OP, 1) f32 (lane broadcast)
        v = jnp.asarray(v, jnp.float32).reshape(-1)
        return jnp.pad(v, (0, OP - v.shape[0])).reshape(OP, 1)

    def full(shape):
        return pl.BlockSpec(shape, lambda b: (0, 0))

    args = [xe, mask, w1_r, colvec(params["s1"]), colvec(params["b1"]),
            w2_r, colvec(params["s2"]), colvec(params["b2"])]
    in_specs = [
        pl.BlockSpec((1, CP, Lbi), lambda b: (b, 0, 0)),
        full((1, Lout)),
        full((OP, 9 * CP)), full((OP, 1)), full((OP, 1)),
        full((OP, 9 * OP)), full((OP, 1)), full((OP, 1)),
    ]
    if has_ds:  # only ship downsample params when that branch exists
        wdp = jnp.pad(params["wd"], ((0, CP - C), (0, OP - Cout)))
        wd_r = jnp.transpose(wdp, (1, 0)).astype(jnp.bfloat16)   # (OP, CP)
        args += [wd_r, colvec(params["sd"]), colvec(params["bd"])]
        in_specs += [full((OP, CP)), full((OP, 1)), full((OP, 1))]

    offsets = tuple((kh - 1) * Wp + (kw - 1)
                    for kh in range(3) for kw in range(3))

    # VMEM budget derived from the actual block sizes (double-buffered I/O,
    # im2col intermediates, f32 temps, staging scratch), clamped to the 64 MiB
    # v7x physical per-core VMEM.
    est = (2 * CP * Lbi * 2 + 2 * OP * Lout * 4
           + (9 * CP + 9 * OP) * Lout * 2
           + 6 * OP * Lout * 4 + OP * Ls * 2 + (1 << 20))
    vmem_limit = int(min(max(4 * est, 32 * 1024 * 1024), 64 * 1024 * 1024))

    out = pl.pallas_call(
        functools.partial(residual_block_kernel, offsets=offsets, guard=G,
                          scratch_guard=GS, has_downsample=has_ds),
        out_shape=jax.ShapeDtypeStruct((NB, OP, Lout), jnp.float32),
        grid=(NB,),
        in_specs=in_specs,
        out_specs=pl.BlockSpec((1, OP, Lout), lambda b: (b, 0, 0)),
        scratch_shapes=[pltpu.VMEM((OP, Ls), jnp.bfloat16)],
        compiler_params=pltpu.CompilerParams(
            dimension_semantics=("parallel",),
            vmem_limit_bytes=vmem_limit),
    )(*args)

    # Unpack: drop channel/lane padding, split images, strip the frame border.
    oc = (out[:, :Cout, :Lc].reshape(NB, Cout, TB, Pf).transpose(0, 2, 1, 3)
             .reshape(BN, Cout, Hp, Wp))
    return oc[:, :, 1:-1, 1:-1].reshape(B, N, Cout, H, W)


# ----------------------------------------------------------------------------
# Parameter construction (deterministic, synthetic) + pure-JAX f32 reference
# ----------------------------------------------------------------------------
def fold_bn(gamma, beta, mean, var, eps=1e-5):
    scale = gamma / jnp.sqrt(var + eps)
    bias = beta - mean * scale
    return (scale.reshape(1, -1).astype(jnp.float32),
            bias.reshape(1, -1).astype(jnp.float32))


def make_params(key, c_in, c_out):
    ks = jax.random.split(key, 16)

    def bn_params(k, c):
        k1, k2, k3, k4 = jax.random.split(k, 4)
        gamma = 1.0 + 0.1 * jax.random.normal(k1, (c,), jnp.float32)
        beta = 0.1 * jax.random.normal(k2, (c,), jnp.float32)
        mean = 0.1 * jax.random.normal(k3, (c,), jnp.float32)
        var = jax.random.uniform(k4, (c,), jnp.float32, 0.5, 1.5)
        return fold_bn(gamma, beta, mean, var)

    w1 = 0.1 * jax.random.normal(ks[0], (3, 3, c_in, c_out), jnp.float32)
    w2 = 0.1 * jax.random.normal(ks[1], (3, 3, c_out, c_out), jnp.float32)
    s1, b1 = bn_params(ks[2], c_out)
    s2, b2 = bn_params(ks[3], c_out)
    params = dict(w1=w1, s1=s1, b1=b1, w2=w2, s2=s2, b2=b2,
                  wd=None, sd=None, bd=None)
    if c_in != c_out:
        params["wd"] = 0.1 * jax.random.normal(ks[4], (c_in, c_out), jnp.float32)
        params["sd"], params["bd"] = bn_params(ks[5], c_out)
    return params


def conv2d_nhwc_ref(x, w, stride=1, padding=1):
    return jax.lax.conv_general_dilated(
        x, w, window_strides=(stride, stride),
        padding=[(padding, padding), (padding, padding)],
        dimension_numbers=("NHWC", "HWIO", "NHWC"),
        precision=jax.lax.Precision.HIGHEST)


def residual_block_2d_ref(x, params, *, use_tsm=True):
    if use_tsm:
        x = temporal_shift(x)
    B, N, C, H, W = x.shape
    Cout = params["w1"].shape[-1]
    y = jnp.transpose(x.reshape(B * N, C, H, W), (0, 2, 3, 1))  # NHWC
    h = conv2d_nhwc_ref(y, params["w1"])
    h = jnp.maximum(h * params["s1"][0] + params["b1"][0], 0.0)
    h = conv2d_nhwc_ref(h, params["w2"])
    h = h * params["s2"][0] + params["b2"][0]
    if params["wd"] is not None:
        iden = conv2d_nhwc_ref(y, params["wd"].reshape(1, 1, C, Cout), padding=0)
        iden = iden * params["sd"][0] + params["bd"][0]
    else:
        iden = y
    out = jnp.maximum(h + iden, 0.0)
    return jnp.transpose(out, (0, 3, 1, 2)).reshape(B, N, Cout, H, W)


# ----------------------------------------------------------------------------
if __name__ == "__main__":
    key = jax.random.PRNGKey(0)
    kx, kp1, kp2 = jax.random.split(key, 3)

    B, N, H, W = 2, 4, 16, 16
    # Tolerance: kernel runs bf16 activations / bf16 MXU matmuls (f32 accum),
    # reference is full-f32 HIGHEST precision; bf16 rounding compounds over the
    # two stacked 3x3 convs and the (now bf16) identity shortcut.
    TOL = dict(rtol=5e-2, atol=5e-2)

    # Config A: c_in != c_out -> downsample (1x1 conv + BN) path.
    c_in, c_out = 8, 16
    x = jax.random.normal(kx, (B, N, c_in, H, W), jnp.float32)
    params = make_params(kp1, c_in, c_out)
    out = residual_block_2d(x, params, use_tsm=True)
    out = jax.block_until_ready(out)
    ref = residual_block_2d_ref(x, params, use_tsm=True)
    assert out.shape == (B, N, c_out, H, W)
    assert jnp.allclose(out, ref, **TOL), "mismatch (downsample config)"

    # Config B: c_in == c_out -> pure identity shortcut.
    c_in2 = c_out2 = 16
    x2 = jax.random.normal(kx, (B, N, c_in2, H, W), jnp.float32)
    params2 = make_params(kp2, c_in2, c_out2)
    out2 = residual_block_2d(x2, params2, use_tsm=True)
    out2 = jax.block_until_ready(out2)
    ref2 = residual_block_2d_ref(x2, params2, use_tsm=True)
    assert out2.shape == (B, N, c_out2, H, W)
    assert jnp.allclose(out2, ref2, **TOL), "mismatch (identity config)"

    print("KERNEL_OK")
</pallas_src>

<mosaic_0001>
module attributes {stable_mosaic.version = 11 : i64} {
  func.func @residual_block_kernel(%arg0: i32, %arg1: memref<1x16x896xbf16, #tpu.memory_space<vmem>>, %arg2: memref<1x768xf32, #tpu.memory_space<vmem>>, %arg3: memref<16x144xbf16, #tpu.memory_space<vmem>>, %arg4: memref<16x1xf32, #tpu.memory_space<vmem>>, %arg5: memref<16x1xf32, #tpu.memory_space<vmem>>, %arg6: memref<16x144xbf16, #tpu.memory_space<vmem>>, %arg7: memref<16x1xf32, #tpu.memory_space<vmem>>, %arg8: memref<16x1xf32, #tpu.memory_space<vmem>>, %arg9: memref<16x16xbf16, #tpu.memory_space<vmem>>, %arg10: memref<16x1xf32, #tpu.memory_space<vmem>>, %arg11: memref<16x1xf32, #tpu.memory_space<vmem>>, %arg12: memref<1x16x768xf32, #tpu.memory_space<vmem>>, %arg13: memref<16x1024xbf16, #tpu.memory_space<vmem>>) attributes {dimension_semantics = [#tpu.dimension_semantics<parallel>], iteration_bounds = array<i64: 4>, scalar_prefetch = 0 : i64, scratch_operands = 1 : i64, tpu.core_type = #tpu.core_type<tc>, window_params = [{transform_indices = @transform_0, window_bounds = array<i64: 1, 16, 896>}, {pipeline_mode = #tpu.pipeline_mode<synchronous>, transform_indices = @transform_1, window_bounds = array<i64: 1, 768>}, {pipeline_mode = #tpu.pipeline_mode<synchronous>, transform_indices = @transform_2, window_bounds = array<i64: 16, 144>}, {pipeline_mode = #tpu.pipeline_mode<synchronous>, transform_indices = @transform_3, window_bounds = array<i64: 16, 1>}, {pipeline_mode = #tpu.pipeline_mode<synchronous>, transform_indices = @transform_4, window_bounds = array<i64: 16, 1>}, {pipeline_mode = #tpu.pipeline_mode<synchronous>, transform_indices = @transform_5, window_bounds = array<i64: 16, 144>}, {pipeline_mode = #tpu.pipeline_mode<synchronous>, transform_indices = @transform_6, window_bounds = array<i64: 16, 1>}, {pipeline_mode = #tpu.pipeline_mode<synchronous>, transform_indices = @transform_7, window_bounds = array<i64: 16, 1>}, {pipeline_mode = #tpu.pipeline_mode<synchronous>, transform_indices = @transform_8, window_bounds = array<i64: 16, 16>}, {pipeline_mode = #tpu.pipeline_mode<synchronous>, transform_indices = @transform_9, window_bounds = array<i64: 16, 1>}, {pipeline_mode = #tpu.pipeline_mode<synchronous>, transform_indices = @transform_10, window_bounds = array<i64: 16, 1>}, {transform_indices = @transform_11, window_bounds = array<i64: 1, 16, 768>}]} {
    %c0 = arith.constant 0 : index
    %c0_0 = arith.constant 0 : index
    %0 = vector.load %arg2[%c0, %c0_0] : memref<1x768xf32, #tpu.memory_space<vmem>>, vector<1x768xf32>
    %c0_1 = arith.constant 0 : index
    %c0_2 = arith.constant 0 : index
    %c0_3 = arith.constant 0 : index
    %1 = vector.load %arg1[%c0_1, %c0_2, %c0_3] : memref<1x16x896xbf16, #tpu.memory_space<vmem>>, vector<1x16x768xbf16>
    %2 = vector.shape_cast %1 : vector<1x16x768xbf16> to vector<16x768xbf16>
    %c0_4 = arith.constant 0 : index
    %c0_5 = arith.constant 0 : index
    %c1 = arith.constant 1 : index
    %3 = vector.load %arg1[%c0_4, %c0_5, %c1] : memref<1x16x896xbf16, #tpu.memory_space<vmem>>, vector<1x16x768xbf16>
    %4 = vector.shape_cast %3 : vector<1x16x768xbf16> to vector<16x768xbf16>
    %c0_6 = arith.constant 0 : index
    %c0_7 = arith.constant 0 : index
    %c2 = arith.constant 2 : index
    %5 = vector.load %arg1[%c0_6, %c0_7, %c2] : memref<1x16x896xbf16, #tpu.memory_space<vmem>>, vector<1x16x768xbf16>
    %6 = vector.shape_cast %5 : vector<1x16x768xbf16> to vector<16x768xbf16>
    %c0_8 = arith.constant 0 : index
    %c0_9 = arith.constant 0 : index
    %c18 = arith.constant 18 : index
    %7 = vector.load %arg1[%c0_8, %c0_9, %c18] : memref<1x16x896xbf16, #tpu.memory_space<vmem>>, vector<1x16x768xbf16>
    %8 = vector.shape_cast %7 : vector<1x16x768xbf16> to vector<16x768xbf16>
    %c0_10 = arith.constant 0 : index
    %c0_11 = arith.constant 0 : index
    %c19 = arith.constant 19 : index
    %9 = vector.load %arg1[%c0_10, %c0_11, %c19] : memref<1x16x896xbf16, #tpu.memory_space<vmem>>, vector<1x16x768xbf16>
    %10 = vector.shape_cast %9 : vector<1x16x768xbf16> to vector<16x768xbf16>
    %c0_12 = arith.constant 0 : index
    %c0_13 = arith.constant 0 : index
    %c20 = arith.constant 20 : index
    %11 = vector.load %arg1[%c0_12, %c0_13, %c20] : memref<1x16x896xbf16, #tpu.memory_space<vmem>>, vector<1x16x768xbf16>
    %12 = vector.shape_cast %11 : vector<1x16x768xbf16> to vector<16x768xbf16>
    %c0_14 = arith.constant 0 : index
    %c0_15 = arith.constant 0 : index
    %c36 = arith.constant 36 : index
    %13 = vector.load %arg1[%c0_14, %c0_15, %c36] : memref<1x16x896xbf16, #tpu.memory_space<vmem>>, vector<1x16x768xbf16>
    %14 = vector.shape_cast %13 : vector<1x16x768xbf16> to vector<16x768xbf16>
    %c0_16 = arith.constant 0 : index
    %c0_17 = arith.constant 0 : index
    %c37 = arith.constant 37 : index
    %15 = vector.load %arg1[%c0_16, %c0_17, %c37] : memref<1x16x896xbf16, #tpu.memory_space<vmem>>, vector<1x16x768xbf16>
    %16 = vector.shape_cast %15 : vector<1x16x768xbf16> to vector<16x768xbf16>
    %c0_18 = arith.constant 0 : index
    %c0_19 = arith.constant 0 : index
    %c38 = arith.constant 38 : index
    %17 = vector.load %arg1[%c0_18, %c0_19, %c38] : memref<1x16x896xbf16, #tpu.memory_space<vmem>>, vector<1x16x768xbf16>
    %18 = vector.shape_cast %17 : vector<1x16x768xbf16> to vector<16x768xbf16>
    %19 = tpu.concatenate %2, %4, %6, %8, %10, %12, %14, %16, %18 in 0 : vector<16x768xbf16>, vector<16x768xbf16>, vector<16x768xbf16>, vector<16x768xbf16>, vector<16x768xbf16>, vector<16x768xbf16>, vector<16x768xbf16>, vector<16x768xbf16>, vector<16x768xbf16> -> vector<144x768xbf16>
    %c0_20 = arith.constant 0 : index
    %c0_21 = arith.constant 0 : index
    %20 = vector.load %arg3[%c0_20, %c0_21] : memref<16x144xbf16, #tpu.memory_space<vmem>>, vector<16x144xbf16>
    %cst = arith.constant dense<0.000000e+00> : vector<16x768xf32>
    %21 = tpu.matmul %20, %19, %cst {dimension_numbers = #tpu.dot_dimension_numbers<[1], [0], [0], [1], [0, 0, 1, 1], [], []>} : vector<16x144xbf16>, vector<144x768xbf16>, vector<16x768xf32> -> vector<16x768xf32>
    %c0_22 = arith.constant 0 : index
    %c0_23 = arith.constant 0 : index
    %22 = vector.load %arg4[%c0_22, %c0_23] : memref<16x1xf32, #tpu.memory_space<vmem>>, vector<16x1xf32>
    %23 = vector.broadcast %22 : vector<16x1xf32> to vector<16x768xf32>
    %24 = arith.mulf %21, %23 : vector<16x768xf32>
    %c0_24 = arith.constant 0 : index
    %c0_25 = arith.constant 0 : index
    %25 = vector.load %arg5[%c0_24, %c0_25] : memref<16x1xf32, #tpu.memory_space<vmem>>, vector<16x1xf32>
    %26 = vector.broadcast %25 : vector<16x1xf32> to vector<16x768xf32>
    %27 = arith.addf %24, %26 : vector<16x768xf32>
    %cst_26 = arith.constant 0.000000e+00 : f32
    %28 = vector.broadcast %cst_26 : f32 to vector<16x768xf32>
    %29 = arith.maximumf %27, %28 : vector<16x768xf32>
    %30 = vector.broadcast %0 : vector<1x768xf32> to vector<16x768xf32>
    %31 = arith.mulf %29, %30 : vector<16x768xf32>
    %cst_27 = arith.constant 0.000000e+00 : bf16
    %32 = vector.broadcast %cst_27 : bf16 to vector<16x128xbf16>
    %c0_28 = arith.constant 0 : index
    %c0_29 = arith.constant 0 : index
    %33 = vector.load %arg13[%c0_28, %c0_29] : memref<16x1024xbf16, #tpu.memory_space<vmem>>, vector<16x128xbf16>
    tpu.vector_store %arg13[%c0_28, %c0_29], %32 {strides = array<i32>} : memref<16x1024xbf16, #tpu.memory_space<vmem>>, vector<16x128xbf16>,
    %cst_30 = arith.constant 0.000000e+00 : bf16
    %34 = vector.broadcast %cst_30 : bf16 to vector<16x128xbf16>
    %c0_31 = arith.constant 0 : index
    %c896 = arith.constant 896 : index
    %35 = vector.load %arg13[%c0_31, %c896] : memref<16x1024xbf16, #tpu.memory_space<vmem>>, vector<16x128xbf16>
    tpu.vector_store %arg13[%c0_31, %c896], %34 {strides = array<i32>} : memref<16x1024xbf16, #tpu.memory_space<vmem>>, vector<16x128xbf16>,
    %36 = arith.truncf %31 : vector<16x768xf32> to vector<16x768xbf16>
    %c0_32 = arith.constant 0 : index
    %c128 = arith.constant 128 : index
    %37 = vector.load %arg13[%c0_32, %c128] : memref<16x1024xbf16, #tpu.memory_space<vmem>>, vector<16x768xbf16>
    tpu.vector_store %arg13[%c0_32, %c128], %36 {strides = array<i32>} : memref<16x1024xbf16, #tpu.memory_space<vmem>>, vector<16x768xbf16>,
    %c0_33 = arith.constant 0 : index
    %c109 = arith.constant 109 : index
    %38 = vector.load %arg13[%c0_33, %c109] : memref<16x1024xbf16, #tpu.memory_space<vmem>>, vector<16x768xbf16>
    %c0_34 = arith.constant 0 : index
    %c110 = arith.constant 110 : index
    %39 = vector.load %arg13[%c0_34, %c110] : memref<16x1024xbf16, #tpu.memory_space<vmem>>, vector<16x768xbf16>
    %c0_35 = arith.constant 0 : index
    %c111 = arith.constant 111 : index
    %40 = vector.load %arg13[%c0_35, %c111] : memref<16x1024xbf16, #tpu.memory_space<vmem>>, vector<16x768xbf16>
    %c0_36 = arith.constant 0 : index
    %c127 = arith.constant 127 : index
    %41 = vector.load %arg13[%c0_36, %c127] : memref<16x1024xbf16, #tpu.memory_space<vmem>>, vector<16x768xbf16>
    %c0_37 = arith.constant 0 : index
    %c128_38 = arith.constant 128 : index
    %42 = vector.load %arg13[%c0_37, %c128_38] : memref<16x1024xbf16, #tpu.memory_space<vmem>>, vector<16x768xbf16>
    %c0_39 = arith.constant 0 : index
    %c129 = arith.constant 129 : index
    %43 = vector.load %arg13[%c0_39, %c129] : memref<16x1024xbf16, #tpu.memory_space<vmem>>, vector<16x768xbf16>
    %c0_40 = arith.constant 0 : index
    %c145 = arith.constant 145 : index
    %44 = vector.load %arg13[%c0_40, %c145] : memref<16x1024xbf16, #tpu.memory_space<vmem>>, vector<16x768xbf16>
    %c0_41 = arith.constant 0 : index
    %c146 = arith.constant 146 : index
    %45 = vector.load %arg13[%c0_41, %c146] : memref<16x1024xbf16, #tpu.memory_space<vmem>>, vector<16x768xbf16>
    %c0_42 = arith.constant 0 : index
    %c147 = arith.constant 147 : index
    %46 = vector.load %arg13[%c0_42, %c147] : memref<16x1024xbf16, #tpu.memory_space<vmem>>, vector<16x768xbf16>
    %47 = tpu.concatenate %38, %39, %40, %41, %42, %43, %44, %45, %46 in 0 : vector<16x768xbf16>, vector<16x768xbf16>, vector<16x768xbf16>, vector<16x768xbf16>, vector<16x768xbf16>, vector<16x768xbf16>, vector<16x768xbf16>, vector<16x768xbf16>, vector<16x768xbf16> -> vector<144x768xbf16>
    %c0_43 = arith.constant 0 : index
    %c0_44 = arith.constant 0 : index
    %48 = vector.load %arg6[%c0_43, %c0_44] : memref<16x144xbf16, #tpu.memory_space<vmem>>, vector<16x144xbf16>
    %cst_45 = arith.constant dense<0.000000e+00> : vector<16x768xf32>
    %49 = tpu.matmul %48, %47, %cst_45 {dimension_numbers = #tpu.dot_dimension_numbers<[1], [0], [0], [1], [0, 0, 1, 1], [], []>} : vector<16x144xbf16>, vector<144x768xbf16>, vector<16x768xf32> -> vector<16x768xf32>
    %c0_46 = arith.constant 0 : index
    %c0_47 = arith.constant 0 : index
    %50 = vector.load %arg7[%c0_46, %c0_47] : memref<16x1xf32, #tpu.memory_space<vmem>>, vector<16x1xf32>
    %51 = vector.broadcast %50 : vector<16x1xf32> to vector<16x768xf32>
    %52 = arith.mulf %49, %51 : vector<16x768xf32>
    %c0_48 = arith.constant 0 : index
    %c0_49 = arith.constant 0 : index
    %53 = vector.load %arg8[%c0_48, %c0_49] : memref<16x1xf32, #tpu.memory_space<vmem>>, vector<16x1xf32>
    %54 = vector.broadcast %53 : vector<16x1xf32> to vector<16x768xf32>
    %55 = arith.addf %52, %54 : vector<16x768xf32>
    %c0_50 = arith.constant 0 : index
    %c0_51 = arith.constant 0 : index
    %56 = vector.load %arg9[%c0_50, %c0_51] : memref<16x16xbf16, #tpu.memory_space<vmem>>, vector<16x16xbf16>
    %cst_52 = arith.constant dense<0.000000e+00> : vector<16x768xf32>
    %57 = tpu.matmul %56, %10, %cst_52 {dimension_numbers = #tpu.dot_dimension_numbers<[1], [0], [0], [1], [0, 0, 1, 1], [], []>} : vector<16x16xbf16>, vector<16x768xbf16>, vector<16x768xf32> -> vector<16x768xf32>
    %c0_53 = arith.constant 0 : index
    %c0_54 = arith.constant 0 : index
    %58 = vector.load %arg10[%c0_53, %c0_54] : memref<16x1xf32, #tpu.memory_space<vmem>>, vector<16x1xf32>
    %59 = vector.broadcast %58 : vector<16x1xf32> to vector<16x768xf32>
    %60 = arith.mulf %57, %59 : vector<16x768xf32>
    %c0_55 = arith.constant 0 : index
    %c0_56 = arith.constant 0 : index
    %61 = vector.load %arg11[%c0_55, %c0_56] : memref<16x1xf32, #tpu.memory_space<vmem>>, vector<16x1xf32>
    %62 = vector.broadcast %61 : vector<16x1xf32> to vector<16x768xf32>
    %63 = arith.addf %60, %62 : vector<16x768xf32>
    %64 = arith.addf %55, %63 : vector<16x768xf32>
    %cst_57 = arith.constant 0.000000e+00 : f32
    %65 = vector.broadcast %cst_57 : f32 to vector<16x768xf32>
    %66 = arith.maximumf %64, %65 : vector<16x768xf32>
    %c0_58 = arith.constant 0 : index
    %c0_59 = arith.constant 0 : index
    %c0_60 = arith.constant 0 : index
    %67 = vector.load %arg12[%c0_58, %c0_59, %c0_60] : memref<1x16x768xf32, #tpu.memory_space<vmem>>, vector<1x16x768xf32>
    %68 = vector.shape_cast %67 : vector<1x16x768xf32> to vector<16x768xf32>
    %69 = vector.shape_cast %66 : vector<16x768xf32> to vector<1x16x768xf32>
    tpu.vector_store %arg12[%c0_58, %c0_59, %c0_60], %69 {strides = array<i32>} : memref<1x16x768xf32, #tpu.memory_space<vmem>>, vector<1x16x768xf32>,
    return
  }
  func.func @transform_0(%arg0: i32) -> (i32, i32, i32) {
    %c0_i32 = arith.constant 0 : i32
    %c0_i32_0 = arith.constant 0 : i32
    %c0_i32_1 = arith.constant 0 : i32
    return %arg0, %c0_i32, %c0_i32_0 : i32, i32, i32
  }
  func.func @transform_1(%arg0: i32) -> (i32, i32) {
    %c0_i32 = arith.constant 0 : i32
    %c0_i32_0 = arith.constant 0 : i32
    %c0_i32_1 = arith.constant 0 : i32
    return %c0_i32, %c0_i32_0 : i32, i32
  }
  func.func @transform_2(%arg0: i32) -> (i32, i32) {
    %c0_i32 = arith.constant 0 : i32
    %c0_i32_0 = arith.constant 0 : i32
    %c0_i32_1 = arith.constant 0 : i32
    return %c0_i32, %c0_i32_0 : i32, i32
  }
  func.func @transform_3(%arg0: i32) -> (i32, i32) {
    %c0_i32 = arith.constant 0 : i32
    %c0_i32_0 = arith.constant 0 : i32
    %c0_i32_1 = arith.constant 0 : i32
    return %c0_i32, %c0_i32_0 : i32, i32
  }
  func.func @transform_4(%arg0: i32) -> (i32, i32) {
    %c0_i32 = arith.constant 0 : i32
    %c0_i32_0 = arith.constant 0 : i32
    %c0_i32_1 = arith.constant 0 : i32
    return %c0_i32, %c0_i32_0 : i32, i32
  }
  func.func @transform_5(%arg0: i32) -> (i32, i32) {
    %c0_i32 = arith.constant 0 : i32
    %c0_i32_0 = arith.constant 0 : i32
    %c0_i32_1 = arith.constant 0 : i32
    return %c0_i32, %c0_i32_0 : i32, i32
  }
  func.func @transform_6(%arg0: i32) -> (i32, i32) {
    %c0_i32 = arith.constant 0 : i32
    %c0_i32_0 = arith.constant 0 : i32
    %c0_i32_1 = arith.constant 0 : i32
    return %c0_i32, %c0_i32_0 : i32, i32
  }
  func.func @transform_7(%arg0: i32) -> (i32, i32) {
    %c0_i32 = arith.constant 0 : i32
    %c0_i32_0 = arith.constant 0 : i32
    %c0_i32_1 = arith.constant 0 : i32
    return %c0_i32, %c0_i32_0 : i32, i32
  }
  func.func @transform_8(%arg0: i32) -> (i32, i32) {
    %c0_i32 = arith.constant 0 : i32
    %c0_i32_0 = arith.constant 0 : i32
    %c0_i32_1 = arith.constant 0 : i32
    return %c0_i32, %c0_i32_0 : i32, i32
  }
  func.func @transform_9(%arg0: i32) -> (i32, i32) {
    %c0_i32 = arith.constant 0 : i32
    %c0_i32_0 = arith.constant 0 : i32
    %c0_i32_1 = arith.constant 0 : i32
    return %c0_i32, %c0_i32_0 : i32, i32
  }
  func.func @transform_10(%arg0: i32) -> (i32, i32) {
    %c0_i32 = arith.constant 0 : i32
    %c0_i32_0 = arith.constant 0 : i32
    %c0_i32_1 = arith.constant 0 : i32
    return %c0_i32, %c0_i32_0 : i32, i32
  }
  func.func @transform_11(%arg0: i32) -> (i32, i32, i32) {
    %c0_i32 = arith.constant 0 : i32
    %c0_i32_0 = arith.constant 0 : i32
    %c0_i32_1 = arith.constant 0 : i32
    return %arg0, %c0_i32, %c0_i32_0 : i32, i32, i32
  }
}

</mosaic_0001>

<bundles_post_ra>
// kernel: residual_block_2d.1
= control target key start
LH: loop header
LB: loop body
LE: loop exit
PB: predicated region body
PF: predicated region fallthrough
CT: control target
= control target key end

     0   :  { %s2127_s17 = smov 0   ;;  %s3009_s0 = inlined_call_operand.vmem [shape: bf16[4,16,896], index: 0, kind: input, shape index: {}]   ;;  %s3010_s1 = inlined_call_operand.vmem [shape: f32[1,768], index: 1, kind: input, shape index: {}]   ;;  %s3011_s2 = inlined_call_operand.vmem [shape: bf16[16,144], index: 2, kind: input, shape index: {}]   ;;  %s3012_s3 = inlined_call_operand.vmem [shape: f32[16,1], index: 3, kind: input, shape index: {}]   ;;  %s3013_s4 = inlined_call_operand.vmem [shape: f32[16,1], index: 4, kind: input, shape index: {}]   ;;  %s3014_s5 = inlined_call_operand.vmem [shape: bf16[16,144], index: 5, kind: input, shape index: {}]   ;;  %s3015_s6 = inlined_call_operand.vmem [shape: f32[16,1], index: 6, kind: input, shape index: {}]   ;;  %s3016_s7 = inlined_call_operand.vmem [shape: f32[16,1], index: 7, kind: input, shape index: {}]   ;;  %s3017_s8 = inlined_call_operand.vmem [shape: bf16[16,16], index: 8, kind: input, shape index: {}]   ;;  %s3018_s9 = inlined_call_operand.vmem [shape: f32[16,1], index: 9, kind: input, shape index: {}]   ;;  %s3019_s10 = inlined_call_operand.vmem [shape: f32[16,1], index: 10, kind: input, shape index: {}]   ;;  %s3020_s11 = inlined_call_operand.vmem [shape: f32[4,16,768], index: 11, kind: output, shape index: {}]  }
   0x1 LB: > { %s1936_s18 = sadd.s32 4294967295, %s2055_s17   ;;  %p1940_p0 = scmp.ge.s32.totalorder %s2055_s17, 1  ;;  %s2055_s17 = sphi %s2127_s17, %s21_s17  }
   0x2   : > { %p337_p1 = scmp.lt.s32.totalorder %s2055_s17, 5 }
   0x4   : > { %p338_p2 = pnand %p1940_p0, %p337_p1 }
   0x5   : > { %p377_p3 = scmp.lt.s32.totalorder (!%p338_p2), %s1936_s18, 3  ;;  %s2057_s23 = smov (!%p338_p2), 91  }
   0x6   : > { %341 = sbr.rel (%p338_p2) target bundleno = 1040 (0x410), region = 64  ;;  %s2058_s24 = smov (!%p338_p2), 92  }
   0x7   : > { %s2059_s25 = smov (!%p338_p2), 108   ;;  %s2060_s26 = smov (!%p338_p2), 109  }
   0x8   : > { %s2061_s27 = smov (!%p338_p2), 110   ;;  %s2062_s28 = smov (!%p338_p2), 126  }
   0x9   : > { %s2063_s29 = smov (!%p338_p2), 127   ;;  %s2064_s13 = smov (!%p338_p2), 90  }
   0xb   : > { %s3022_s18 = smov (!%p377_p3, %s1936_s18), 3  ;;  %v2225_v5 = vld [vmem:[%s3011_s2 + $0x4] ss:$8 sps:$4 sm:$0xff]   ;;  %vm689_vm0 = vcmask 130048   ;;  %v2065_v8 = vmov 0   ;;  %vm638_vm1 = vcmask 744448  }
   0xc   : > { %s2004_s19 = smul.u32 56, %s3022_s18  ;;  %1958 = vmatprep.mubr.msk.bf16.mxu0 %vm689_vm0, %v2225_v5  ;;  %1959 = vmatprep.mubr.msk.bf16.mxu1 %vm689_vm0, %v2225_v5  ;;  %925 = vst [vmem:[#allocation2] sm:$0xf] %v2065_v8  ;;  %926 = vst [vmem:[#allocation2 + $0x20] sm:$0xf] %v2065_v8  ;;  %v822_v9 = vld [vmem:[%s3012_s3] sm:$0xff] }
   0xd   : > { %2025 = vset.pattern.permute.xlu1 %v2065_v8  ;;  %927 = vst [vmem:[#allocation2 + $0x1c] sm:$0xf] %v2065_v8  ;;  %928 = vst [vmem:[#allocation2 + $0x3c] sm:$0xf] %v2065_v8  ;;  %2024 = vset.pattern.permute.xlu0 %v2065_v8  ;;  %v823_v10 = vld [vmem:[%s3012_s3 + $0x8] sm:$0xff]  ;;  %v846_v13 = vld [vmem:[%s3013_s4] sm:$0xff] }
   0xe   : > { %s2141_s22 = scalar_lea.vmem %s3009_s0, %s2004_s19  ;;  %v847_v11 = vld [vmem:[%s3013_s4 + $0x8] sm:$0xff]  ;;  %vm611_vm2 = vcmask 752640   ;;  %vm584_vm3 = vcmask 883712   ;;  %vm557_vm4 = vcmask 891904   ;;  %vm530_vm5 = vcmask 900096   ;;  %s2066_s19 = smov 19  }
   0xf   : > { %v2144_v0 = vld [vmem:[%s2141_s22 + $0x4] ss:$28 sps:$4 sm:$0xff]   ;;  %v2167_v3 = vld [vmem:[%s2141_s22 + $0xc] ss:$28 sps:$4 sm:$0xff]   ;;  %v2242_v6 = vld [vmem:[%s2141_s22 + $0x14] ss:$28 sps:$4 sm:$0xff]  }
  0x10   : > { %v2147_v1 = vld [vmem:[%s2141_s22] ss:$28 sps:$4 sm:$0xff]   ;;  %626 = vrot.lane.b32.xlu0 %v2144_v0, %s2057_s23  ;;  %v2152_v2 = vld [vmem:[%s2141_s22 + $0x8] ss:$28 sps:$4 sm:$0xff]   ;;  %v2172_v4 = vld [vmem:[%s2141_s22 + $0x10] ss:$28 sps:$4 sm:$0xff]  }
  0x11   : > { %624 = vrot.lane.b32.xlu1 %v2147_v1, %s2057_s23  ;;  %v2035_v7 = vld [vmem:[%s2141_s22 + $0x18] ss:$28 sps:$4 sm:$0xff]   ;;  %vm503_vm6 = vcmask 1031168   ;;  %vm476_vm7 = vcmask 1039360   ;;  %vm665_vm8 = vcmask 736256   ;;  %vm1369_vm9 = vcmask 154624  }
  0x14   : > { %628 = vrot.lane.b32.xlu0 %v2152_v2, %s2057_s23 }
  0x15   : > { %599 = vrot.lane.b32.xlu1 %v2144_v0, %s2058_s24 }
  0x18   : > { %601 = vrot.lane.b32.xlu0 %v2152_v2, %s2058_s24 }
  0x19   : > { %597 = vrot.lane.b32.xlu1 %v2147_v1, %s2058_s24 }
  0x1c   : > { %572 = vrot.lane.b32.xlu0 %v2144_v0, %s2059_s25 }
  0x1d   : > { %574 = vrot.lane.b32.xlu1 %v2152_v2, %s2059_s25 }
  0x20   : > { %630 = vrot.lane.b32.xlu0 %v2167_v3, %s2057_s23 }
  0x21   : > { %632 = vrot.lane.b32.xlu1 %v2172_v4, %s2057_s23 }
  0x24   : > { %570 = vrot.lane.b32.xlu0 %v2147_v1, %s2059_s25 }
  0x25   : > { %545 = vrot.lane.b32.xlu1 %v2144_v0, %s2060_s26 }
  0x28   : > { %547 = vrot.lane.b32.xlu0 %v2152_v2, %s2060_s26 }
  0x29   : > { %603 = vrot.lane.b32.xlu1 %v2167_v3, %s2058_s24 }
  0x2c   : > { %605 = vrot.lane.b32.xlu0 %v2172_v4, %s2058_s24 }
  0x2d   : > { %543 = vrot.lane.b32.xlu1 %v2147_v1, %s2060_s26 }
  0x30   : > { %518 = vrot.lane.b32.xlu0 %v2144_v0, %s2061_s27 }
  0x31   : > { %520 = vrot.lane.b32.xlu1 %v2152_v2, %s2061_s27 }
  0x34   : > { %576 = vrot.lane.b32.xlu0 %v2167_v3, %s2059_s25 }
  0x35   : > { %578 = vrot.lane.b32.xlu1 %v2172_v4, %s2059_s25 }
  0x38   : > { %516 = vrot.lane.b32.xlu0 %v2147_v1, %s2061_s27 }
  0x39   : > { %491 = vrot.lane.b32.xlu1 %v2144_v0, %s2062_s28 }
  0x3c   : > { %493 = vrot.lane.b32.xlu0 %v2152_v2, %s2062_s28 }
  0x3d   : > { %549 = vrot.lane.b32.xlu1 %v2167_v3, %s2060_s26 }
  0x40   : > { %551 = vrot.lane.b32.xlu0 %v2172_v4, %s2060_s26 }
  0x41   : > { %489 = vrot.lane.b32.xlu1 %v2147_v1, %s2062_s28 }
  0x44   : > { %464 = vrot.lane.b32.xlu0 %v2144_v0, %s2063_s29 }
  0x45   : > { %466 = vrot.lane.b32.xlu1 %v2152_v2, %s2063_s29 }
  0x48   : > { %522 = vrot.lane.b32.xlu0 %v2167_v3, %s2061_s27 }
  0x49   : > { %524 = vrot.lane.b32.xlu1 %v2172_v4, %s2061_s27 }
  0x4c   : > { %462 = vrot.lane.b32.xlu0 %v2147_v1, %s2063_s29 }
  0x4d   : > { %495 = vrot.lane.b32.xlu1 %v2167_v3, %s2062_s28 }
  0x50   : > { %497 = vrot.lane.b32.xlu0 %v2172_v4, %s2062_s28 }
  0x51   : > { %468 = vrot.lane.b32.xlu1 %v2167_v3, %s2063_s29 }
  0x54   : > { %470 = vrot.lane.b32.xlu0 %v2172_v4, %s2063_s29 }
  0x55   : > { %653 = vrot.lane.b32.xlu1 %v2144_v0, %s2064_s13 }
  0x58   : > { %655 = vrot.lane.b32.xlu0 %v2152_v2, %s2064_s13 }
  0x59   : > { %651 = vrot.lane.b32.xlu1 %v2147_v1, %s2064_s13 }
  0x5c   : > { %634 = vrot.lane.b32.xlu0 %v2242_v6, %s2057_s23 }
  0x5d   : > { %636 = vrot.lane.b32.xlu1 %v2035_v7, %s2057_s23 }
  0x60   : > { %607 = vrot.lane.b32.xlu0 %v2242_v6, %s2058_s24 }
  0x61   : > { %609 = vrot.lane.b32.xlu1 %v2035_v7, %s2058_s24 }
  0x64   : > { %657 = vrot.lane.b32.xlu0 %v2167_v3, %s2064_s13 }
  0x65   : > { %659 = vrot.lane.b32.xlu1 %v2172_v4, %s2064_s13 }
  0x68   : > { %580 = vrot.lane.b32.xlu0 %v2242_v6, %s2059_s25 }
  0x69   : > { %582 = vrot.lane.b32.xlu1 %v2035_v7, %s2059_s25 }
  0x6c   : > { %553 = vrot.lane.b32.xlu0 %v2242_v6, %s2060_s26 }
  0x6d   : > { %555 = vrot.lane.b32.xlu1 %v2035_v7, %s2060_s26 }
  0x70   : > { %526 = vrot.lane.b32.xlu0 %v2242_v6, %s2061_s27 }
  0x71   : > { %528 = vrot.lane.b32.xlu1 %v2035_v7, %s2061_s27 }
  0x74   : > { %499 = vrot.lane.b32.xlu0 %v2242_v6, %s2062_s28 }
  0x75   : > { %501 = vrot.lane.b32.xlu1 %v2035_v7, %s2062_s28 }
  0x78   : > { %472 = vrot.lane.b32.xlu0 %v2242_v6, %s2063_s29 }
  0x79   : > { %474 = vrot.lane.b32.xlu1 %v2035_v7, %s2063_s29 }
  0x7c   : > { %661 = vrot.lane.b32.xlu0 %v2242_v6, %s2064_s13 }
  0x7d   : > { %663 = vrot.lane.b32.xlu1 %v2035_v7, %s2064_s13 }
  0x80   : > { %826 = vperm.xlu0 %2024, %v822_v9  }
  0x81   : > { %831 = vperm.xlu1 %2025, %v823_v10  }
  0x82   : > { %v627_v12 = vpop.permute.xlu0 %626 }
  0x83   : > { %v625_v14 = vpop.permute.xlu1 %624 }
  0x84   : > { %855 = vperm.xlu0 %2024, %v847_v11   ;;  %v639_v18 = vsel %vm638_vm1, %v625_v14, %v627_v12 }
  0x85   : > { %850 = vperm.xlu1 %2025, %v846_v13  }
  0x86   : > { %v629_v15 = vpop.permute.xlu0 %628 }
  0x87   : > { %v600_v16 = vpop.permute.xlu1 %599  ;;  %v640_v17 = vsel %vm638_vm1, %v627_v12, %v629_v15 }
  0x88   : > { %693 = vmatprep.subr.bf16.mxu0 %v640_v17 }
  0x89   : > { %694 = vmatpush1.bf16.msra.mxu0 %v639_v18 }
  0x8a   : > { %v602_v19 = vpop.permute.xlu0 %601 }
  0x8b   : > { %v598_v20 = vpop.permute.xlu1 %597  ;;  %v613_v21 = vsel %vm611_vm2, %v600_v16, %v602_v19 }
  0x8c   : > { %695 = vmatprep.subr.bf16.mxu0 %v613_v21  ;;  %v612_v22 = vsel %vm611_vm2, %v598_v20, %v600_v16 }
  0x8d   : > { %696 = vmatpush1.bf16.msra.mxu0 %v612_v22 }
  0x8e   : > { %v573_v23 = vpop.permute.xlu0 %572 }
  0x8f   : > { %v575_v24 = vpop.permute.xlu1 %574 }
  0x90   : > { %v586_v25 = vsel %vm584_vm3, %v573_v23, %v575_v24 }
  0x91   : > { %697 = vmatprep.subr.bf16.mxu0 %v586_v25 }
  0x92   : > { %v631_v26 = vpop.permute.xlu0 %630 }
  0x93   : > { %v2298_v27 = vpop.permute.xlu1 %632  ;;  %v641_v28 = vsel %vm638_vm1, %v629_v15, %v631_v26 }
  0x94   : > { %v642_v29 = vsel %vm638_vm1, %v631_v26, %v2298_v27 }
  0x95   : > { %736 = vmatprep.subr.bf16.mxu1 %v642_v29 }
  0x96   : > { %737 = vmatpush1.bf16.msra.mxu1 %v641_v28  ;;  %v571_v30 = vpop.permute.xlu0 %570 }
  0x97   : > { %v546_v31 = vpop.permute.xlu1 %545  ;;  %v585_v32 = vsel %vm584_vm3, %v571_v30, %v573_v23  ;;  %v2038_v23 = vld [vmem:[%s3011_s2] ss:$8 sps:$4 sm:$0xff]  }
  0x98   : > { %698 = vmatpush1.bf16.msra.mxu0 %v585_v32 }
  0x9a   : > { %v548_v33 = vpop.permute.xlu0 %547 }
  0x9b   : > { %v604_v34 = vpop.permute.xlu1 %603  ;;  %v2305_v35 = vsel %vm557_vm4, %v546_v31, %v548_v33 }
  0x9c   : > { %699 = vmatprep.subr.bf16.mxu0 %v2305_v35  ;;  %v614_v40 = vsel %vm611_vm2, %v602_v19, %v604_v34 }
  0x9e   : > { %v2308_v36 = vpop.permute.xlu0 %605 }
  0x9f   : > { %v544_v37 = vpop.permute.xlu1 %543  ;;  %v615_v38 = vsel %vm611_vm2, %v604_v34, %v2308_v36 }
  0xa0   : > { %v2313_v39 = vsel %vm557_vm4, %v544_v37, %v546_v31  ;;  %738 = vmatprep.subr.bf16.mxu1 %v615_v38 }
  0xa1   : > { %700 = vmatpush1.bf16.msra.mxu0 %v2313_v39  ;;  %739 = vmatpush1.bf16.msra.mxu1 %v614_v40 }
  0xa2   : > { %v519_v41 = vpop.permute.xlu0 %518 }
  0xa3   : > { %v521_v42 = vpop.permute.xlu1 %520 }
  0xa4   : > { %v532_v43 = vsel %vm530_vm5, %v519_v41, %v521_v42 }
  0xa5   : > { %701 = vmatprep.subr.bf16.mxu0 %v532_v43 }
  0xa6   : > { %v577_v44 = vpop.permute.xlu0 %576 }
  0xa7   : > { %v2318_v45 = vpop.permute.xlu1 %578  ;;  %v587_v46 = vsel %vm584_vm3, %v575_v24, %v577_v44 }
  0xa8   : > { %v588_v47 = vsel %vm584_vm3, %v577_v44, %v2318_v45 }
  0xa9   : > { %740 = vmatprep.subr.bf16.mxu1 %v588_v47 }
  0xaa   : > { %741 = vmatpush1.bf16.msra.mxu1 %v587_v46  ;;  %v517_v48 = vpop.permute.xlu0 %516 }
  0xab   : > { %v492_v49 = vpop.permute.xlu1 %491  ;;  %v531_v50 = vsel %vm530_vm5, %v517_v48, %v519_v41 }
  0xac   : > { %702 = vmatpush1.bf16.msra.mxu0 %v531_v50 }
  0xae   : > { %v494_v51 = vpop.permute.xlu0 %493 }
  0xaf   : > { %v550_v52 = vpop.permute.xlu1 %549  ;;  %v505_v53 = vsel %vm503_vm6, %v492_v49, %v494_v51 }
  0xb0   : > { %703 = vmatprep.subr.bf16.mxu0 %v505_v53  ;;  %v2334_v58 = vsel %vm557_vm4, %v548_v33, %v550_v52 }
  0xb2   : > { %v2325_v54 = vpop.permute.xlu0 %551 }
  0xb3   : > { %v490_v55 = vpop.permute.xlu1 %489  ;;  %v2329_v56 = vsel %vm557_vm4, %v550_v52, %v2325_v54 }
  0xb4   : > { %v504_v57 = vsel %vm503_vm6, %v490_v55, %v492_v49  ;;  %742 = vmatprep.subr.bf16.mxu1 %v2329_v56 }
  0xb5   : > { %704 = vmatpush1.bf16.msra.mxu0 %v504_v57  ;;  %743 = vmatpush1.bf16.msra.mxu1 %v2334_v58 }
  0xb6   : > { %v465_v59 = vpop.permute.xlu0 %464 }
  0xb7   : > { %v467_v60 = vpop.permute.xlu1 %466 }
  0xb8   : > { %v478_v61 = vsel %vm476_vm7, %v465_v59, %v467_v60 }
  0xb9   : > { %705 = vmatprep.subr.bf16.mxu0 %v478_v61  ;;  %v988_v61 = vld [vmem:[#allocation2 + $0x1c] sm:$0xf] }
  0xba   : > { %v523_v62 = vpop.permute.xlu0 %522 }
  0xbb   : > { %v2338_v63 = vpop.permute.xlu1 %524  ;;  %v533_v7 = vsel %vm530_vm5, %v521_v42, %v523_v62 }
  0xbc   : > { %v534_v9 = vsel %vm530_vm5, %v523_v62, %v2338_v63  ;;  %v992_v62 = vld [vmem:[#allocation2 + $0x3c] sm:$0xf] }
  0xbd   : > { %744 = vmatprep.subr.bf16.mxu1 %v534_v9 }
  0xbe   : > { %745 = vmatpush1.bf16.msra.mxu1 %v533_v7  ;;  %v463_v10 = vpop.permute.xlu0 %462 }
  0xbf   : > { %v496_v11 = vpop.permute.xlu1 %495  ;;  %v477_v12 = vsel %vm476_vm7, %v463_v10, %v465_v59 }
  0xc0   : > { %706 = vmatpush1.bf16.msra.mxu0 %v477_v12  ;;  %v506_v16 = vsel %vm503_vm6, %v494_v51, %v496_v11 }
  0xc1   : > { %707 = vmatprep.subr.bf16.mxu0 %v2144_v0 }
  0xc2   : > { %v2345_v13 = vpop.permute.xlu0 %497 }
  0xc3   : > { %v469_v14 = vpop.permute.xlu1 %468  ;;  %v507_v15 = vsel %vm503_vm6, %v496_v11, %v2345_v13 }
  0xc4   : > { %746 = vmatprep.subr.bf16.mxu1 %v507_v15  ;;  %708 = vmatpush1.bf16.msra.mxu0 %v2147_v1  ;;  %v479_v0 = vsel %vm476_vm7, %v467_v60, %v469_v14 }
  0xc5   : > { %747 = vmatpush1.bf16.msra.mxu1 %v506_v16 }
  0xc6   : > { %v2351_v17 = vpop.permute.xlu0 %470 }
  0xc7   : > { %v654_v18 = vpop.permute.xlu1 %653  ;;  %v480_v19 = vsel %vm476_vm7, %v469_v14, %v2351_v17 }
  0xc8   : > { %748 = vmatprep.subr.bf16.mxu1 %v480_v19 }
  0xc9   : > { %749 = vmatpush1.bf16.msra.mxu1 %v479_v0 }
  0xca   : > { %v656_v20 = vpop.permute.xlu0 %655  ;;  %750 = vmatprep.subr.bf16.mxu1 %v2167_v3 }
  0xcb   : > { %v652_v21 = vpop.permute.xlu1 %651  ;;  %v667_v22 = vsel %vm665_vm8, %v654_v18, %v656_v20 }
  0xcc   : > { %723 = vmatprep.subr.bf16.mxu0 %v667_v22  ;;  %v666_v1 = vsel %vm665_vm8, %v652_v21, %v654_v18 }
  0xcd   : > { %724 = vmatpush2.bf16.msra.mxu0 %v666_v1  ;;  %751 = vmatpush1.bf16.msra.mxu1 %v2152_v2 }
  0xce   : > { %v635_v24 = vpop.permute.xlu0 %634 }
  0xcf   : > { %v637_v25 = vpop.permute.xlu1 %636  ;;  %v643_v26 = vsel %vm638_vm1, %v2298_v27, %v635_v24 }
  0xd0   : > { %726 = vmatmul.mubr.bf16.vlgmr.msra.gmra.mxu0 %v2038_v23  ;;  %v644_v3 = vsel %vm638_vm1, %v635_v24, %v637_v25 }
  0xd1   : > { %779 = vmatprep.subr.bf16.mxu0 %v644_v3  ;;  %1960 = vmatprep.mubr.msk.bf16.mxu0 %vm689_vm0, %v2225_v5 }
  0xd2   : > { %780 = vmatpush1.bf16.msra.mxu0 %v643_v26  ;;  %v608_v28 = vpop.permute.xlu0 %607 }
  0xd3   : > { %v610_v29 = vpop.permute.xlu1 %609  ;;  %v616_v30 = vsel %vm611_vm2, %v2308_v36, %v608_v28 }
  0xd4   : > { %v617_v2 = vsel %vm611_vm2, %v608_v28, %v610_v29 }
  0xd5   : > { %781 = vmatprep.subr.bf16.mxu0 %v617_v2 }
  0xd6   : > { %782 = vmatpush1.bf16.msra.mxu0 %v616_v30  ;;  %v658_v31 = vpop.permute.xlu0 %657 }
  0xd7   : > { %v660_v32 = vpop.permute.xlu1 %659  ;;  %v668_v27 = vsel %vm665_vm8, %v656_v20, %v658_v31 }
  0xd8   : > { %v669_v33 = vsel %vm665_vm8, %v658_v31, %v660_v32 }
  0xd9   : > { %766 = vmatprep.subr.bf16.mxu1 %v669_v33 }
  0xda   : > { %767 = vmatpush2.bf16.msra.mxu1 %v668_v27  ;;  %v581_v34 = vpop.permute.xlu0 %580 }
  0xdb   : > { %v583_v5 = vpop.permute.xlu1 %582  ;;  %v589_v37 = vsel %vm584_vm3, %v2318_v45, %v581_v34 }
  0xdc   : > { %v590_v38 = vsel %vm584_vm3, %v581_v34, %v583_v5 }
  0xdd   : > { %769 = vmatmul.mubr.bf16.vlgmr.msra.gmra.mxu1 %v2038_v23  ;;  %783 = vmatprep.subr.bf16.mxu0 %v590_v38 }
  0xde   : > { %784 = vmatpush1.bf16.msra.mxu0 %v589_v37  ;;  %v554_v36 = vpop.permute.xlu0 %553 }
  0xdf   : > { %v556_v40 = vpop.permute.xlu1 %555  ;;  %v2378_v41 = vsel %vm557_vm4, %v2325_v54, %v554_v36 }
  0xe0   : > { %v2381_v42 = vsel %vm557_vm4, %v554_v36, %v556_v40 }
  0xe1   : > { %785 = vmatprep.subr.bf16.mxu0 %v2381_v42 }
  0xe2   : > { %786 = vmatpush1.bf16.msra.mxu0 %v2378_v41  ;;  %v527_v43 = vpop.permute.xlu0 %526 }
  0xe3   : > { %v529_v44 = vpop.permute.xlu1 %528  ;;  %v535_v45 = vsel %vm530_vm5, %v2338_v63, %v527_v43  ;;  %v1986_v63 = vcombine.low %v988_v61, %v992_v62 }
  0xe4   : > { %v536_v46 = vsel %vm530_vm5, %v527_v43, %v529_v44 }
  0xe5   : > { %787 = vmatprep.subr.bf16.mxu0 %v536_v46  ;;  %1204 = vrot.lane.b32.xlu1 %v1986_v63, %s2057_s23 }
  0xe6   : > { %788 = vmatpush1.bf16.msra.mxu0 %v535_v45  ;;  %v500_v47 = vpop.permute.xlu0 %499 }
  0xe7   : > { %v502_v48 = vpop.permute.xlu1 %501  ;;  %v508_v49 = vsel %vm503_vm6, %v2345_v13, %v500_v47  ;;  %v2414_v13 = vld [vmem:[%s3010_s1] sm:$0x3f] }
  0xe8   : > { %v509_v50 = vsel %vm503_vm6, %v500_v47, %v502_v48 }
  0xe9   : > { %789 = vmatprep.subr.bf16.mxu0 %v509_v50  ;;  %1184 = vrot.lane.b32.xlu1 %v1986_v63, %s2058_s24 }
  0xea   : > { %790 = vmatpush1.bf16.msra.mxu0 %v508_v49  ;;  %v473_v51 = vpop.permute.xlu0 %472 }
  0xeb   : > { %v475_v52 = vpop.permute.xlu1 %474  ;;  %v481_v53 = vsel %vm476_vm7, %v2351_v17, %v473_v51 }
  0xec   : > { %v482_v54 = vsel %vm476_vm7, %v473_v51, %v475_v52 }
  0xed   : > { %791 = vmatprep.subr.bf16.mxu0 %v482_v54  ;;  %1164 = vrot.lane.b32.xlu1 %v1986_v63, %s2059_s25 }
  0xee   : > { %792 = vmatpush1.bf16.msra.mxu0 %v481_v53  ;;  %v662_v55 = vpop.permute.xlu0 %661 }
  0xef   : > { %793 = vmatprep.subr.bf16.mxu0 %v2242_v6  ;;  %v664_v57 = vpop.permute.xlu1 %663  ;;  %v670_v60 = vsel %vm665_vm8, %v660_v32, %v662_v55  ;;  %v883_v6 = vlaneseq }
  0xf0   : > { %v671_v59 = vsel %vm665_vm8, %v662_v55, %v664_v57 }
  0xf1   : > { %1224 = vrot.lane.b32.xlu1 %v1986_v63, %s2064_s13 }
  0xf2   : > { %794 = vmatpush1.bf16.msra.mxu0 %v2172_v4  ;;  %v2404_v4 = vshrl.u32 %v883_v6, 7 }
  0xf3   : > { %809 = vmatprep.subr.bf16.mxu0 %v671_v59 }
  0xf4   : > { %v885_v10 = vsub.s32 0, %v2404_v4  ;;  %v889_v15 = vsub.s32 1, %v2404_v4  ;;  %v893_v34 = vsub.s32 2, %v2404_v4  ;;  %v897_v38 = vsub.s32 3, %v2404_v4 }
  0xf6   : > { %810 = vmatpush2.bf16.msra.mxu0 %v670_v60  ;;  %v886_v19 = vrot.slane %v2414_v13, %v885_v10  ;;  %v894_v45 = vrot.slane %v2414_v13, %v893_v34  ;;  %v898_v51 = vrot.slane %v2414_v13, %v897_v38 }
  0xf9   : > { %812 = vmatmul.mubr.bf16.vlgmr.msra.gmra.mxu0 %v2038_v23  ;;  %v890_v23 = vrot.slane %v2414_v13, %v889_v15 }
  0xfb   : > { %v2406_v9 = vpop.permute.xlu0 %826 }
  0xfc   : > { %v2402_v7 = vpop.permute.xlu1 %831 }
  0xff   : > { %v2421_v20 = vpop.permute.xlu0 %855 }
 0x100   : > { %v2409_v12 = vpop.permute.xlu1 %850 }
 0x190   : > { %v727_v11 = vpop.f32.mrf.mxu0 }
 0x191   : > { %v834_v14 = vmul.f32 %v2406_v9, %v727_v11 }
 0x192   : > { %v729_v16 = vpop.f32.mrf.mxu0 }
 0x193   : > { %v835_v17 = vmul.f32 %v2406_v9, %v729_v16  ;;  %v858_v18 = vadd.f32 %v2409_v12, %v834_v14 }
 0x194   : > { %v731_v0 = vpop.f32.mrf.mxu0 }
 0x195   : > { %v840_v21 = vmul.f32 %v2402_v7, %v731_v0  ;;  %v859_v22 = vadd.f32 %v2409_v12, %v835_v17  ;;  %v870_v1 = vmax.f32 %v858_v18, 0.0  ;;  %v901_v17 = vsub.s32 4, %v2404_v4 }
 0x196   : > { %v733_v24 = vpop.f32.mrf.mxu0  ;;  %v905_v18 = vsub.s32 5, %v2404_v4 }
 0x197   : > { %v841_v25 = vmul.f32 %v2402_v7, %v733_v24  ;;  %v864_v26 = vadd.f32 %v2421_v20, %v840_v21  ;;  %v871_v3 = vmax.f32 %v859_v22, 0.0  ;;  %v913_v28 = vmul.f32 %v886_v19, %v870_v1 }
 0x198   : > { %v906_v24 = vrot.slane %v2414_v13, %v905_v18 }
 0x199   : > { %v865_v29 = vadd.f32 %v2421_v20, %v841_v25  ;;  %v876_v30 = vmax.f32 %v864_v26, 0.0  ;;  %v914_v2 = vmul.f32 %v890_v23, %v871_v3 }
 0x19b   : > { %v877_v31 = vmax.f32 %v865_v29, 0.0  ;;  %v919_v32 = vmul.f32 %v886_v19, %v876_v30  ;;  %v1998_v27 = vpack.c.bf16 %v914_v2, %v913_v28 }
 0x19d   : > { %v770_v33 = vpop.f32.mrf.mxu1  ;;  %v920_v5 = vmul.f32 %v890_v23, %v877_v31  ;;  %965 = vst [vmem:[#allocation2 + $0x4] sm:$0xff] %v1998_v27  ;;  %v2437_v48 = vpack.c.bf16 %v919_v32, %v913_v28  ;;  %v902_v23 = vrot.slane %v2414_v13, %v901_v17 }
 0x19e   : > { %v836_v37 = vmul.f32 %v2406_v9, %v770_v33 }
 0x19f   : > { %v2001_v36 = vpack.c.bf16 %v920_v5, %v919_v32  ;;  %v772_v40 = vpop.f32.mrf.mxu1  ;;  %v2435_v47 = vpack.c.bf16 %v920_v5, %v914_v2  ;;  %1192 = vrot.lane.b32.xlu1 %v2437_v48, %s2057_s23 }
 0x1a0   : > { %v860_v43 = vadd.f32 %v2409_v12, %v836_v37  ;;  %v837_v44 = vmul.f32 %v2406_v9, %v772_v40 }
 0x1a1   : > { %968 = vst [vmem:[#allocation2 + $0x24] sm:$0xff] %v2001_v36  ;;  %v774_v46 = vpop.f32.mrf.mxu1  ;;  %1194 = vrot.lane.b32.xlu0 %v2435_v47, %s2057_s23 }
 0x1a2   : > { %v872_v49 = vmax.f32 %v860_v43, 0.0  ;;  %v861_v50 = vadd.f32 %v2409_v12, %v837_v44  ;;  %v842_v52 = vmul.f32 %v2402_v7, %v774_v46 }
 0x1a3   : > { %v776_v53 = vpop.f32.mrf.mxu1 }
 0x1a4   : > { %v873_v54 = vmax.f32 %v861_v50, 0.0  ;;  %v866_v55 = vadd.f32 %v2421_v20, %v842_v52  ;;  %v843_v57 = vmul.f32 %v2402_v7, %v776_v53  ;;  %v915_v59 = vmul.f32 %v894_v45, %v872_v49  ;;  %v971_v30 = vld [vmem:[#allocation2] sm:$0xff] }
 0x1a5   : > { %1172 = vrot.lane.b32.xlu0 %v2437_v48, %s2058_s24 }
 0x1a6   : > { %v2448_v60 = vmul.f32 %v898_v51, %v873_v54  ;;  %v878_v61 = vmax.f32 %v866_v55, 0.0  ;;  %v867_v62 = vadd.f32 %v2421_v20, %v843_v57 }
 0x1a8   : > { %v1999_v63 = vpack.c.bf16 %v2448_v60, %v915_v59  ;;  %v879_v6 = vmax.f32 %v867_v62, 0.0  ;;  %v921_v10 = vmul.f32 %v894_v45, %v878_v61 }
 0x1aa   : > { %966 = vst [vmem:[#allocation2 + $0xc] sm:$0xff] %v1999_v63  ;;  %v922_v11 = vmul.f32 %v898_v51, %v879_v6  ;;  %v2454_v15 = vpack.c.bf16 %v921_v10, %v915_v59  ;;  %v2526_v51 = vpop.permute.xlu1 %1204 }
 0x1ac   : > { %v2002_v14 = vpack.c.bf16 %v922_v11, %v921_v10  ;;  %1176 = vrot.lane.b32.xlu0 %v2454_v15, %s2058_s24  ;;  %1196 = vrot.lane.b32.xlu1 %v2454_v15, %s2057_s23 }
 0x1ae   : > { %969 = vst [vmem:[#allocation2 + $0x2c] sm:$0xff] %v2002_v14  ;;  %v2533_v53 = vpop.permute.xlu1 %1184 }
 0x1b0   : > { %1154 = vrot.lane.b32.xlu0 %v2435_v47, %s2059_s25  ;;  %1174 = vrot.lane.b32.xlu1 %v2435_v47, %s2058_s24 }
 0x1b1   : > { %v972_v4 = vld [vmem:[#allocation2 + $0x8] sm:$0xff] }
 0x1b2   : > { %v2541_v57 = vpop.permute.xlu1 %1164 }
 0x1b4   : > { %1152 = vrot.lane.b32.xlu1 %v2437_v48, %s2059_s25  ;;  %1106 = vrot.lane.b32.xlu0 %v2437_v48, %s2060_s26 }
 0x1b5   : > { %v976_v21 = vld [vmem:[#allocation2 + $0x28] sm:$0xff] }
 0x1b6   : > { %v1969_v29 = vcombine.low %v972_v4, %v976_v21  ;;  %v1970_v43 = vcombine.high %v972_v4, %v976_v21  ;;  %v2549_v59 = vpop.permute.xlu1 %1224 }
 0x1b8   : > { %1156 = vrot.lane.b32.xlu1 %v2454_v15, %s2059_s25  ;;  %1110 = vrot.lane.b32.xlu0 %v2454_v15, %s2060_s26 }
 0x1b9   : > { %v813_v16 = vpop.f32.mrf.mxu0 }
 0x1ba   : > { %v838_v19 = vmul.f32 %v2406_v9, %v813_v16 }
 0x1bb   : > { %v815_v0 = vpop.f32.mrf.mxu0 }
 0x1bc   : > { %v862_v22 = vadd.f32 %v2409_v12, %v838_v19  ;;  %v839_v1 = vmul.f32 %v2406_v9, %v815_v0  ;;  %v975_v9 = vld [vmem:[#allocation2 + $0x20] sm:$0xff]  ;;  %1108 = vrot.lane.b32.xlu1 %v2435_v47, %s2060_s26  ;;  %1066 = vrot.lane.b32.xlu0 %v1969_v29, %s2061_s27 }
 0x1bd   : > { %v817_v25 = vpop.f32.mrf.mxu0  ;;  %v1968_v13 = vcombine.high %v971_v30, %v975_v9  ;;  %v1967_v33 = vcombine.low %v971_v30, %v975_v9 }
 0x1be   : > { %v874_v26 = vmax.f32 %v862_v22, 0.0  ;;  %v863_v3 = vadd.f32 %v2409_v12, %v839_v1  ;;  %v844_v28 = vmul.f32 %v2402_v7, %v817_v25 }
 0x1bf   : > { %v819_v2 = vpop.f32.mrf.mxu0 }
 0x1c0   : > { %v875_v31 = vmax.f32 %v863_v3, 0.0  ;;  %v868_v32 = vadd.f32 %v2421_v20, %v844_v28  ;;  %v845_v27 = vmul.f32 %v2402_v7, %v819_v2  ;;  %v917_v34 = vmul.f32 %v902_v23, %v874_v26  ;;  %1064 = vrot.lane.b32.xlu1 %v1968_v13, %s2061_s27  ;;  %1062 = vrot.lane.b32.xlu0 %v1967_v33, %s2061_s27 }
 0x1c2   : > { %v918_v12 = vmul.f32 %v906_v24, %v875_v31  ;;  %v880_v5 = vmax.f32 %v868_v32, 0.0  ;;  %v869_v37 = vadd.f32 %v2421_v20, %v845_v27  ;;  %v2046_v20 = vpack.c.bf16 %v922_v11, %v2448_v60 }
 0x1c4   : > { %v2000_v38 = vpack.c.bf16 %v918_v12, %v917_v34  ;;  %v881_v36 = vmax.f32 %v869_v37, 0.0  ;;  %v923_v7 = vmul.f32 %v902_v23, %v880_v5  ;;  %1068 = vrot.lane.b32.xlu1 %v1970_v43, %s2061_s27  ;;  %1046 = vrot.lane.b32.xlu0 %v1969_v29, %s2062_s28 }
 0x1c6   : > { %967 = vst [vmem:[#allocation2 + $0x14] sm:$0xff] %v2000_v38  ;;  %v924_v40 = vmul.f32 %v906_v24, %v881_v36  ;;  %v2047_v45 = vpack.c.bf16 %v923_v7, %v917_v34 }
 0x1c8   : > { %v2003_v44 = vpack.c.bf16 %v924_v40, %v923_v7  ;;  %1044 = vrot.lane.b32.xlu1 %v1968_v13, %s2062_s28  ;;  %1042 = vrot.lane.b32.xlu0 %v1967_v33, %s2062_s28  ;;  %v2048_v46 = vpack.c.bf16 %v924_v40, %v918_v12 }
 0x1ca   : > { %970 = vst [vmem:[#allocation2 + $0x34] sm:$0xff] %v2003_v44 }
 0x1cc   : > { %1048 = vrot.lane.b32.xlu1 %v1970_v43, %s2062_s28  ;;  %1026 = vrot.lane.b32.xlu0 %v1969_v29, %s2063_s29 }
 0x1cd   : > { %v974_v54 = vld [vmem:[#allocation2 + $0x18] sm:$0xf] }
 0x1d0   : > { %1024 = vrot.lane.b32.xlu1 %v1968_v13, %s2063_s29  ;;  %1022 = vrot.lane.b32.xlu0 %v1967_v33, %s2063_s29 }
 0x1d1   : > { %v978_v52 = vld [vmem:[#allocation2 + $0x38] sm:$0xf] }
 0x1d2   : > { %v2535_v55 = vcombine.low %v974_v54, %v978_v52 }
 0x1d4   : > { %1028 = vrot.lane.b32.xlu1 %v1970_v43, %s2063_s29  ;;  %1214 = vrot.lane.b32.xlu0 %v2435_v47, %s2064_s13  ;;  %v977_v47 = vld [vmem:[#allocation2 + $0x30] sm:$0xff] }
 0x1d8   : > { %1198 = vrot.lane.b32.xlu1 %v2046_v20, %s2057_s23  ;;  %1158 = vrot.lane.b32.xlu0 %v2046_v20, %s2059_s25 }
 0x1dc   : > { %1178 = vrot.lane.b32.xlu1 %v2046_v20, %s2058_s24  ;;  %1112 = vrot.lane.b32.xlu0 %v2046_v20, %s2060_s26 }
 0x1e0   : > { %1212 = vrot.lane.b32.xlu1 %v2437_v48, %s2064_s13  ;;  %1218 = vrot.lane.b32.xlu0 %v2046_v20, %s2064_s13  ;;  %v973_v48 = vld [vmem:[#allocation2 + $0x10] sm:$0xff] }
 0x1e1   : > { %v1971_v49 = vcombine.low %v973_v48, %v977_v47  ;;  %v2521_v50 = vcombine.high %v973_v48, %v977_v47 }
 0x1e4   : > { %1216 = vrot.lane.b32.xlu1 %v2454_v15, %s2064_s13  ;;  %1247 = vrot.lane.b32.xlu0 %v1969_v29, %s2066_s19 }
 0x1e8   : > { %1245 = vrot.lane.b32.xlu1 %v1968_v13, %s2066_s19  ;;  %1200 = vrot.lane.b32.xlu0 %v2047_v45, %s2057_s23 }
 0x1ec   : > { %1243 = vrot.lane.b32.xlu1 %v1967_v33, %s2066_s19  ;;  %1180 = vrot.lane.b32.xlu0 %v2047_v45, %s2058_s24 }
 0x1f0   : > { %1249 = vrot.lane.b32.xlu1 %v1970_v43, %s2066_s19  ;;  %1202 = vrot.lane.b32.xlu0 %v2048_v46, %s2057_s23 }
 0x1f4   : > { %1160 = vrot.lane.b32.xlu1 %v2047_v45, %s2059_s25  ;;  %1182 = vrot.lane.b32.xlu0 %v2048_v46, %s2058_s24 }
 0x1f8   : > { %1114 = vrot.lane.b32.xlu1 %v2047_v45, %s2060_s26  ;;  %1070 = vrot.lane.b32.xlu0 %v1971_v49, %s2061_s27 }
 0x1fc   : > { %1072 = vrot.lane.b32.xlu1 %v2521_v50, %s2061_s27  ;;  %1162 = vrot.lane.b32.xlu0 %v2048_v46, %s2059_s25 }
 0x200   : > { %1052 = vrot.lane.b32.xlu1 %v2521_v50, %s2062_s28  ;;  %1050 = vrot.lane.b32.xlu0 %v1971_v49, %s2062_s28 }
 0x204   : > { %1030 = vrot.lane.b32.xlu1 %v1971_v49, %s2063_s29  ;;  %1116 = vrot.lane.b32.xlu0 %v2048_v46, %s2060_s26 }
 0x208   : > { %1074 = vrot.lane.b32.xlu1 %v2535_v55, %s2061_s27  ;;  %1032 = vrot.lane.b32.xlu0 %v2521_v50, %s2063_s29 }
 0x20c   : > { %1034 = vrot.lane.b32.xlu1 %v2535_v55, %s2063_s29  ;;  %1054 = vrot.lane.b32.xlu0 %v2535_v55, %s2062_s28  ;;  %s2005_s28 = smul.u32 96, %s3022_s18 }
 0x210   : > { %1220 = vrot.lane.b32.xlu1 %v2047_v45, %s2064_s13  ;;  %1222 = vrot.lane.b32.xlu0 %v2048_v46, %s2064_s13  ;;  %s2971_s13 = scalar_lea.vmem %s3020_s11, %s2005_s28 }
 0x211   : > { %v1193_v62 = vpop.permute.xlu1 %1192 }
 0x213   : > { %v1195_v60 = vpop.permute.xlu0 %1194 }
 0x214   : > { %1251 = vrot.lane.b32.xlu0 %v1971_v49, %s2066_s19  ;;  %v1206_v18 = vsel %vm638_vm1, %v1193_v62, %v1195_v60 }
 0x217   : > { %v1173_v61 = vpop.permute.xlu0 %1172 }
 0x218   : > { %1327 = vrot.lane.b32.xlu1 %v1173_v61, %s2066_s19  ;;  %1341 = vrot.lane.b32.xlu0 %v1193_v62, %s2066_s19 }
 0x21e   : > { %v2554_v63 = vpop.permute.xlu0 %1176  ;;  %v1197_v6 = vpop.permute.xlu1 %1196 }
 0x21f   : > { %v1207_v44 = vsel %vm638_vm1, %v1195_v60, %v1197_v6 }
 0x222   : > { %v2556_v10 = vpop.permute.xlu0 %1154  ;;  %v1175_v11 = vpop.permute.xlu1 %1174 }
 0x223   : > { %v1186_v21 = vsel %vm611_vm2, %v1173_v61, %v1175_v11  ;;  %v1187_v47 = vsel %vm611_vm2, %v1175_v11, %v2554_v63 }
 0x226   : > { %v1153_v14 = vpop.permute.xlu1 %1152  ;;  %v1107_v15 = vpop.permute.xlu0 %1106 }
 0x227   : > { %1299 = vrot.lane.b32.xlu1 %v1107_v15, %s2066_s19  ;;  %1313 = vrot.lane.b32.xlu0 %v1153_v14, %s2066_s19  ;;  %v1166_v60 = vsel %vm584_vm3, %v1153_v14, %v2556_v10 }
 0x22a   : > { %v1157_v16 = vpop.permute.xlu1 %1156  ;;  %v2560_v17 = vpop.permute.xlu0 %1110 }
 0x22b   : > { %1343 = vrot.lane.b32.xlu1 %v1206_v18, %s2066_s19  ;;  %v1167_v23 = vsel %vm584_vm3, %v2556_v10, %v1157_v16 }
 0x22e   : > { %v1109_v19 = vpop.permute.xlu1 %1108  ;;  %v2564_v0 = vpop.permute.xlu0 %1066 }
 0x22f   : > { %1329 = vrot.lane.b32.xlu1 %v1186_v21, %s2066_s19  ;;  %v1118_v4 = vsel %vm557_vm4, %v1107_v15, %v1109_v19  ;;  %v1119_v15 = vsel %vm557_vm4, %v1109_v19, %v2560_v17 }
 0x232   : > { %v2568_v22 = vpop.permute.xlu1 %1064  ;;  %v2570_v1 = vpop.permute.xlu0 %1062 }
 0x233   : > { %1317 = vrot.lane.b32.xlu1 %v1167_v23, %s2066_s19  ;;  %v1077_v21 = vsel %vm530_vm5, %v2568_v22, %v2564_v0  ;;  %v1076_v19 = vsel %vm530_vm5, %v2570_v1, %v2568_v22 }
 0x236   : > { %v2575_v24 = vpop.permute.xlu1 %1068  ;;  %v2577_v25 = vpop.permute.xlu0 %1046 }
 0x237   : > { %1301 = vrot.lane.b32.xlu1 %v1118_v4, %s2066_s19  ;;  %v1078_v28 = vsel %vm530_vm5, %v2564_v0, %v2575_v24 }
 0x23a   : > { %v1045_v26 = vpop.permute.xlu1 %1044  ;;  %v1043_v3 = vpop.permute.xlu0 %1042 }
 0x23b   : > { %1289 = vrot.lane.b32.xlu1 %v1078_v28, %s2066_s19  ;;  %v1057_v9 = vsel %vm503_vm6, %v1045_v26, %v2577_v25  ;;  %v1056_v2 = vsel %vm503_vm6, %v1043_v3, %v1045_v26 }
 0x23e   : > { %v2585_v29 = vpop.permute.xlu1 %1048  ;;  %v2587_v30 = vpop.permute.xlu0 %1026 }
 0x23f   : > { %1273 = vrot.lane.b32.xlu1 %v1057_v9, %s2066_s19  ;;  %v1058_v3 = vsel %vm503_vm6, %v2577_v25, %v2585_v29 }
 0x242   : > { %v2593_v31 = vpop.permute.xlu1 %1024  ;;  %v2595_v32 = vpop.permute.xlu0 %1022 }
 0x243   : > { %1271 = vrot.lane.b32.xlu1 %v1056_v2, %s2066_s19  ;;  %v1037_v28 = vsel %vm476_vm7, %v2593_v31, %v2587_v30  ;;  %v1036_v25 = vsel %vm476_vm7, %v2595_v32, %v2593_v31 }
 0x246   : > { %v2598_v27 = vpop.permute.xlu1 %1028  ;;  %v2600_v13 = vpop.permute.xlu0 %1214 }
 0x247   : > { %v1038_v33 = vsel %vm476_vm7, %v2587_v30, %v2598_v27 }
 0x248   : > { %1261 = vrot.lane.b32.xlu1 %v1038_v33, %s2066_s19 }
 0x24a   : > { %v2606_v34 = vpop.permute.xlu1 %1198  ;;  %v2608_v12 = vpop.permute.xlu0 %1158 }
 0x24b   : > { %v1208_v5 = vsel %vm638_vm1, %v1197_v6, %v2606_v34  ;;  %v1168_v48 = vsel %vm584_vm3, %v1157_v16, %v2608_v12 }
 0x24c   : > { %1347 = vrot.lane.b32.xlu1 %v1208_v5, %s2066_s19 }
 0x24e   : > { %v2613_v37 = vpop.permute.xlu1 %1178  ;;  %v2615_v38 = vpop.permute.xlu0 %1112 }
 0x24f   : > { %v1120_v61 = vsel %vm557_vm4, %v2560_v17, %v2615_v38  ;;  %v1188_v31 = vsel %vm611_vm2, %v2554_v63, %v2613_v37 }
 0x252   : > { %v2617_v36 = vpop.permute.xlu1 %1212  ;;  %v2619_v7 = vpop.permute.xlu0 %1218 }
 0x253   : > { %1355 = vrot.lane.b32.xlu0 %v2617_v36, %s2066_s19 }
 0x256   : > { %v2623_v40 = vpop.permute.xlu1 %1216  ;;  %v1248_v43 = vpop.permute.xlu0 %1247 }
 0x257   : > { %v1227_v20 = vsel %vm665_vm8, %v2600_v13, %v2623_v40  ;;  %1345 = vrot.lane.b32.xlu0 %v1207_v44, %s2066_s19 }
 0x258   : > { %1359 = vrot.lane.b32.xlu1 %v1227_v20, %s2066_s19 }
 0x25a   : > { %v1246_v45 = vpop.permute.xlu1 %1245  ;;  %v2631_v46 = vpop.permute.xlu0 %1200 }
 0x25b   : > { %1331 = vrot.lane.b32.xlu0 %v1187_v47, %s2066_s19  ;;  %v2639_v49 = vsel %vm1369_vm9, %v1246_v45, %v1248_v43 }
 0x25c   : > { %1319 = vrot.lane.b32.xlu1 %v1168_v48, %s2066_s19 }
 0x25e   : > { %v1244_v52 = vpop.permute.xlu1 %1243  ;;  %v1181_v54 = vpop.permute.xlu0 %1180 }
 0x25f   : > { %v2648_v62 = vsel %vm1369_vm9, %v1244_v52, %v1246_v45  ;;  %1315 = vrot.lane.b32.xlu0 %v1166_v60, %s2066_s19  ;;  %v1189_v10 = vsel %vm611_vm2, %v2613_v37, %v1181_v54  ;;  %v1228_v37 = vsel %vm665_vm8, %v2623_v40, %v2619_v7  ;;  %v1209_v40 = vsel %vm638_vm1, %v2606_v34, %v2631_v46 }
 0x260   : > { %1305 = vrot.lane.b32.xlu1 %v1120_v61, %s2066_s19 }
 0x262   : > { %v2652_v6 = vpop.permute.xlu1 %1249  ;;  %v2654_v11 = vpop.permute.xlu0 %1202 }
 0x263   : > { %v2662_v14 = vsel %vm1369_vm9, %v1248_v43, %v2652_v6  ;;  %1303 = vrot.lane.b32.xlu0 %v1119_v15, %s2066_s19  ;;  %v1210_v17 = vsel %vm638_vm1, %v2631_v46, %v2654_v11  ;;  %v1211_v34 = vsel %vm638_vm1, %v2654_v11, %v2526_v51  ;;  %v1797_v11 = vld [vmem:[%s3018_s9] sm:$0xff] }
 0x264   : > { %1335 = vrot.lane.b32.xlu1 %v1189_v10, %s2066_s19  ;;  %v1634_v10 = vld [vmem:[%s3016_s7] sm:$0xff] }
 0x266   : > { %v1161_v16 = vpop.permute.xlu1 %1160  ;;  %v2666_v18 = vpop.permute.xlu0 %1182 }
 0x267   : > { %1287 = vrot.lane.b32.xlu0 %v1077_v21, %s2066_s19  ;;  %v1190_v26 = vsel %vm611_vm2, %v1181_v54, %v2666_v18  ;;  %v1169_v52 = vsel %vm584_vm3, %v2608_v12, %v1161_v16  ;;  %v1610_v12 = vld [vmem:[%s3015_s6] sm:$0xff]  ;;  %v1191_v15 = vsel %vm611_vm2, %v2666_v18, %v2533_v53 }
 0x268   : > { %1351 = vrot.lane.b32.xlu1 %v1210_v17, %s2066_s19  ;;  %v1821_v21 = vld [vmem:[%s3019_s10] sm:$0xff] }
 0x26a   : > { %v2679_v23 = vpop.permute.xlu1 %1114  ;;  %v2681_v4 = vpop.permute.xlu0 %1070 }
 0x26b   : > { %1285 = vrot.lane.b32.xlu0 %v1076_v19, %s2066_s19  ;;  %v1079_v22 = vsel %vm530_vm5, %v2575_v24, %v2681_v4  ;;  %v2711_v24 = vld [vmem:[%s3014_s5 + $0x4] ss:$8 sps:$4 sm:$0xff]  }
 0x26c   : > { %1337 = vrot.lane.b32.xlu1 %v1190_v26, %s2066_s19  ;;  %1989 = vmatprep.mubr.msk.bf16.mxu1 %vm689_vm0, %v2711_v24 }
 0x26d   : > { %1990 = vmatprep.mubr.msk.bf16.mxu0 %vm689_vm0, %v2711_v24 }
 0x26e   : > { %v2687_v0 = vpop.permute.xlu0 %1162  ;;  %v2696_v1 = vpop.permute.xlu1 %1072 }
 0x26f   : > { %1275 = vrot.lane.b32.xlu0 %v1058_v3, %s2066_s19  ;;  %v1170_v2 = vsel %vm584_vm3, %v1161_v16, %v2687_v0  ;;  %v1171_v53 = vsel %vm584_vm3, %v2687_v0, %v2541_v57 }
 0x270   : > { %1291 = vrot.lane.b32.xlu1 %v1079_v22, %s2066_s19 }
 0x272   : > { %v2702_v9 = vpop.permute.xlu0 %1050  ;;  %v2716_v33 = vpop.permute.xlu1 %1052 }
 0x273   : > { %1259 = vrot.lane.b32.xlu0 %v1037_v28, %s2066_s19  ;;  %v1059_v30 = vsel %vm503_vm6, %v2585_v29, %v2702_v9  ;;  %v1226_v29 = vsel %vm665_vm8, %v2617_v36, %v2600_v13  ;;  %v1060_v17 = vsel %vm503_vm6, %v2702_v9, %v2716_v33  ;;  %v1798_v9 = vld [vmem:[%s3018_s9 + $0x8] sm:$0xff] }
 0x274   : > { %1323 = vrot.lane.b32.xlu1 %v1170_v2, %s2066_s19 }
 0x276   : > { %v1117_v5 = vpop.permute.xlu0 %1116  ;;  %v1031_v43 = vpop.permute.xlu1 %1030 }
 0x277   : > { %1257 = vrot.lane.b32.xlu0 %v1036_v25, %s2066_s19  ;;  %v1122_v32 = vsel %vm557_vm4, %v2679_v23, %v1117_v5  ;;  %v1039_v44 = vsel %vm476_vm7, %v2598_v27, %v1031_v43 }
 0x278   : > { %1277 = vrot.lane.b32.xlu1 %v1059_v30, %s2066_s19 }
 0x27a   : > { %v1033_v63 = vpop.permute.xlu0 %1032  ;;  %v1075_v20 = vpop.permute.xlu1 %1074 }
 0x27b   : > { %1333 = vrot.lane.b32.xlu0 %v1188_v31, %s2066_s19  ;;  %v1081_v13 = vsel %vm530_vm5, %v2696_v1, %v1075_v20  ;;  %v1040_v19 = vsel %vm476_vm7, %v1031_v43, %v1033_v63 }
 0x27c   : > { %1309 = vrot.lane.b32.xlu1 %v1122_v32, %s2066_s19 }
 0x27e   : > { %v1055_v27 = vpop.permute.xlu0 %1054  ;;  %v1035_v36 = vpop.permute.xlu1 %1034 }
 0x27f   : > { %1357 = vrot.lane.b32.xlu0 %v1226_v29, %s2066_s19  ;;  %v1061_v45 = vsel %vm503_vm6, %v2716_v33, %v1055_v27  ;;  %v1041_v47 = vsel %vm476_vm7, %v1033_v63, %v1035_v36 }
 0x280   : > { %1263 = vrot.lane.b32.xlu1 %v1039_v44, %s2066_s19 }
 0x282   : > { %v1221_v48 = vpop.permute.xlu1 %1220  ;;  %v1223_v54 = vpop.permute.xlu0 %1222 }
 0x283   : > { %1311 = vrot.lane.b32.xlu0 %v1117_v5, %s2066_s19  ;;  %v1230_v46 = vsel %vm665_vm8, %v1221_v48, %v1223_v54  ;;  %v1229_v57 = vsel %vm665_vm8, %v2619_v7, %v1221_v48  ;;  %v1231_v22 = vsel %vm665_vm8, %v1223_v54, %v2549_v59  ;;  %v1822_v5 = vld [vmem:[%s3019_s10 + $0x8] sm:$0xff] }
 0x284   : > { %1361 = vrot.lane.b32.xlu1 %v1228_v37, %s2066_s19 }
 0x286   : > { %v2814_v26 = vpop.permute.xlu0 %1251 }
 0x287   : > { %1297 = vrot.lane.b32.xlu0 %v1075_v20, %s2066_s19 }
 0x288   : > { %1295 = vrot.lane.b32.xlu1 %v1081_v13, %s2066_s19 }
 0x28a   : > { %v1328_v60 = vpop.permute.xlu1 %1327  ;;  %v1342_v3 = vpop.permute.xlu0 %1341 }
 0x28b   : > { %1283 = vrot.lane.b32.xlu0 %v1055_v27, %s2066_s19 }
 0x28c   : > { %1281 = vrot.lane.b32.xlu1 %v1061_v45, %s2066_s19 }
 0x28f   : > { %1349 = vrot.lane.b32.xlu0 %v1209_v40, %s2066_s19 }
 0x290   : > { %1267 = vrot.lane.b32.xlu1 %v1041_v47, %s2066_s19 }
 0x293   : > { %1321 = vrot.lane.b32.xlu0 %v1169_v52, %s2066_s19 }
 0x294   : > { %1253 = vrot.lane.b32.xlu1 %v2521_v50, %s2066_s19  ;;  %v1121_v50 = vsel %vm557_vm4, %v2615_v38, %v2679_v23  ;;  %v1080_v38 = vsel %vm530_vm5, %v2681_v4, %v2696_v1  ;;  %v1611_v1 = vld [vmem:[%s3015_s6 + $0x8] sm:$0xff] }
 0x297   : > { %1353 = vrot.lane.b32.xlu0 %v1211_v34, %s2066_s19 }
 0x298   : > { %1365 = vrot.lane.b32.xlu1 %v1230_v46, %s2066_s19 }
 0x299   : > { %v2771_v61 = vpop.permute.xlu1 %1299  ;;  %v1314_v28 = vpop.permute.xlu0 %1313 }
 0x29b   : > { %1307 = vrot.lane.b32.xlu0 %v1121_v50, %s2066_s19 }
 0x29c   : > { %1614 = vperm.xlu1 %2025, %v1610_v12  }
 0x29d   : > { %v1344_v51 = vpop.permute.xlu1 %1343 }
 0x29e   : > { %v1412_v30 = vsel %vm1369_vm9, %v1342_v3, %v1344_v51 }
 0x29f   : > { %1339 = vrot.lane.b32.xlu0 %v1191_v15, %s2066_s19 }
 0x2a0   : > { %1801 = vperm.xlu1 %2025, %v1797_v11  }
 0x2a1   : > { %v1330_v16 = vpop.permute.xlu1 %1329 }
 0x2a2   : > { %v1406_v29 = vsel %vm1369_vm9, %v1328_v60, %v1330_v16 }
 0x2a3   : > { %1293 = vrot.lane.b32.xlu0 %v1080_v38, %s2066_s19 }
 0x2a4   : > { %1638 = vperm.xlu1 %2025, %v1634_v10  }
 0x2a5   : > { %v2801_v18 = vpop.permute.xlu1 %1317 }
 0x2a7   : > { %1325 = vrot.lane.b32.xlu0 %v1171_v53, %s2066_s19 }
 0x2a8   : > { %1825 = vperm.xlu1 %2025, %v1821_v21  }
 0x2a9   : > { %v1302_v23 = vpop.permute.xlu1 %1301 }
 0x2ab   : > { %1279 = vrot.lane.b32.xlu0 %v1060_v17, %s2066_s19  ;;  %v2876_v17 = vld [vmem:[%s3014_s5] ss:$8 sps:$4 sm:$0xff]  }
 0x2ad   : > { %v2810_v4 = vpop.permute.xlu1 %1289 }
 0x2af   : > { %1265 = vrot.lane.b32.xlu0 %v1040_v19, %s2066_s19 }
 0x2b1   : > { %v1274_v0 = vpop.permute.xlu1 %1273 }
 0x2b3   : > { %1269 = vrot.lane.b32.xlu0 %v1035_v36, %s2066_s19  ;;  %v1394_v36 = vsel %vm1369_vm9, %v2771_v61, %v1302_v23 }
 0x2b5   : > { %v1272_v7 = vpop.permute.xlu1 %1271 }
 0x2b6   : > { %v1382_v46 = vsel %vm1369_vm9, %v1272_v7, %v1274_v0 }
 0x2b7   : > { %1363 = vrot.lane.b32.xlu0 %v1229_v57, %s2066_s19 }
 0x2ba   : > { %v2828_v25 = vpop.permute.xlu1 %1261 }
 0x2bb   : > { %1255 = vrot.lane.b32.xlu0 %v2535_v55, %s2066_s19  ;;  %v1635_v55 = vld [vmem:[%s3016_s7 + $0x8] sm:$0xff] }
 0x2be   : > { %v1348_v31 = vpop.permute.xlu1 %1347 }
 0x2bf   : > { %1367 = vrot.lane.b32.xlu0 %v1231_v22, %s2066_s19 }
 0x2c3   : > { %1619 = vperm.xlu0 %2024, %v1611_v1  }
 0x2c5   : > { %v1356_v2 = vpop.permute.xlu0 %1355 }
 0x2c7   : > { %1806 = vperm.xlu0 %2024, %v1798_v9  }
 0x2c9   : > { %v2833_v59 = vpop.permute.xlu0 %1345 }
 0x2ca   : > { %v1413_v33 = vsel %vm1369_vm9, %v1344_v51, %v2833_v59  ;;  %v2846_v44 = vpop.permute.xlu1 %1359  ;;  %v1414_v1 = vsel %vm1369_vm9, %v2833_v59, %v1348_v31 }
 0x2cb   : > { %1643 = vperm.xlu0 %2024, %v1635_v55   ;;  %1481 = vmatprep.subr.bf16.mxu1 %v1413_v33 }
 0x2cc   : > { %1482 = vmatpush1.bf16.msra.mxu1 %v1412_v30 }
 0x2cd   : > { %v2841_v32 = vpop.permute.xlu0 %1331 }
 0x2ce   : > { %v1407_v43 = vsel %vm1369_vm9, %v1330_v16, %v2841_v32  ;;  %v1320_v45 = vpop.permute.xlu1 %1319 }
 0x2cf   : > { %1830 = vperm.xlu0 %2024, %v1822_v5   ;;  %1483 = vmatprep.subr.bf16.mxu1 %v1407_v43  ;;  %v1402_v59 = vsel %vm1369_vm9, %v2801_v18, %v1320_v45 }
 0x2d0   : > { %1484 = vmatpush1.bf16.msra.mxu1 %v1406_v29 }
 0x2d1   : > { %v1316_v63 = vpop.permute.xlu0 %1315 }
 0x2d2   : > { %v1400_v37 = vsel %vm1369_vm9, %v1314_v28, %v1316_v63  ;;  %v1401_v20 = vsel %vm1369_vm9, %v1316_v63, %v2801_v18  ;;  %v1306_v48 = vpop.permute.xlu1 %1305 }
 0x2d3   : > { %1485 = vmatprep.subr.bf16.mxu1 %v1401_v20 }
 0x2d4   : > { %1486 = vmatpush1.bf16.msra.mxu1 %v1400_v37 }
 0x2d5   : > { %v2851_v13 = vpop.permute.xlu0 %1303 }
 0x2d6   : > { %v1395_v27 = vsel %vm1369_vm9, %v1302_v23, %v2851_v13  ;;  %v1336_v61 = vpop.permute.xlu1 %1335  ;;  %v1396_v43 = vsel %vm1369_vm9, %v2851_v13, %v1306_v48 }
 0x2d7   : > { %1487 = vmatprep.subr.bf16.mxu1 %v1395_v27 }
 0x2d8   : > { %1488 = vmatpush1.bf16.msra.mxu1 %v1394_v36 }
 0x2d9   : > { %v1288_v40 = vpop.permute.xlu0 %1287 }
 0x2da   : > { %v1389_v47 = vsel %vm1369_vm9, %v1288_v40, %v2810_v4  ;;  %v1352_v51 = vpop.permute.xlu1 %1351 }
 0x2db   : > { %1489 = vmatprep.subr.bf16.mxu1 %v1389_v47 }
 0x2dd   : > { %v1286_v52 = vpop.permute.xlu0 %1285 }
 0x2de   : > { %v1388_v54 = vsel %vm1369_vm9, %v1286_v52, %v1288_v40  ;;  %v1338_v38 = vpop.permute.xlu1 %1337 }
 0x2df   : > { %1490 = vmatpush1.bf16.msra.mxu1 %v1388_v54  ;;  %v1410_v37 = vsel %vm1369_vm9, %v1336_v61, %v1338_v38 }
 0x2e1   : > { %v2860_v60 = vpop.permute.xlu0 %1275 }
 0x2e2   : > { %v1383_v34 = vsel %vm1369_vm9, %v1274_v0, %v2860_v60  ;;  %v1292_v19 = vpop.permute.xlu1 %1291 }
 0x2e3   : > { %1491 = vmatprep.subr.bf16.mxu1 %v1383_v34  ;;  %v1390_v36 = vsel %vm1369_vm9, %v2810_v4, %v1292_v19 }
 0x2e4   : > { %1492 = vmatpush1.bf16.msra.mxu1 %v1382_v46 }
 0x2e5   : > { %v1260_v12 = vpop.permute.xlu0 %1259 }
 0x2e6   : > { %v1377_v50 = vsel %vm1369_vm9, %v1260_v12, %v2828_v25 }
 0x2e7   : > { %1493 = vmatprep.subr.bf16.mxu1 %v1377_v50 }
 0x2e9   : > { %v1258_v11 = vpop.permute.xlu0 %1257 }
 0x2ea   : > { %v1376_v15 = vsel %vm1369_vm9, %v1258_v11, %v1260_v12 }
 0x2eb   : > { %1494 = vmatpush1.bf16.msra.mxu1 %v1376_v15 }
 0x2ec   : > { %1495 = vmatprep.subr.bf16.mxu1 %v2639_v49 }
 0x2ed   : > { %v1334_v10 = vpop.permute.xlu0 %1333 }
 0x2ee   : > { %v1409_v28 = vsel %vm1369_vm9, %v1334_v10, %v1336_v61 }
 0x2ef   : > { %1496 = vmatpush1.bf16.msra.mxu1 %v2648_v62  ;;  %v1324_v62 = vpop.permute.xlu1 %1323 }
 0x2f1   : > { %v1358_v16 = vpop.permute.xlu0 %1357 }
 0x2f2   : > { %v1418_v21 = vsel %vm1369_vm9, %v1356_v2, %v1358_v16  ;;  %v1419_v53 = vsel %vm1369_vm9, %v1358_v16, %v2846_v44 }
 0x2f3   : > { %1511 = vmatprep.subr.bf16.mxu1 %v1419_v53  ;;  %v1278_v0 = vpop.permute.xlu1 %1277 }
 0x2f4   : > { %1512 = vmatpush2.bf16.msra.mxu1 %v1418_v21  ;;  %v1384_v34 = vsel %vm1369_vm9, %v2860_v60, %v1278_v0  ;;  %v1373_v60 = vsel %vm1369_vm9, %v2652_v6, %v2814_v26 }
 0x2f5   : > { %v1312_v23 = vpop.permute.xlu0 %1311 }
 0x2f7   : > { %1514 = vmatmul.mubr.bf16.vlgmr.msra.gmra.mxu1 %v2876_v17  ;;  %v1310_v9 = vpop.permute.xlu1 %1309 }
 0x2f8   : > { %1991 = vmatprep.mubr.msk.bf16.mxu1 %vm689_vm0, %v2711_v24  ;;  %v1408_v24 = vsel %vm1369_vm9, %v2841_v32, %v1334_v10 }
 0x2f9   : > { %v1298_v49 = vpop.permute.xlu0 %1297 }
 0x2fb   : > { %v1264_v5 = vpop.permute.xlu1 %1263 }
 0x2fd   : > { %v2881_v57 = vpop.permute.xlu0 %1283 }
 0x2ff   : > { %v1362_v18 = vpop.permute.xlu1 %1361 }
 0x300   : > { %v1420_v6 = vsel %vm1369_vm9, %v2846_v44, %v1362_v18 }
 0x301   : > { %v1350_v3 = vpop.permute.xlu0 %1349 }
 0x302   : > { %v1415_v22 = vsel %vm1369_vm9, %v1348_v31, %v1350_v3  ;;  %v1416_v30 = vsel %vm1369_vm9, %v1350_v3, %v1352_v51 }
 0x303   : > { %1524 = vmatprep.subr.bf16.mxu0 %v1415_v22 }
 0x304   : > { %1525 = vmatpush1.bf16.msra.mxu0 %v1414_v1 }
 0x305   : > { %1526 = vmatprep.subr.bf16.mxu0 %v1409_v28  ;;  %v1322_v7 = vpop.permute.xlu0 %1321 }
 0x306   : > { %v1403_v2 = vsel %vm1369_vm9, %v1320_v45, %v1322_v7  ;;  %v1296_v45 = vpop.permute.xlu1 %1295  ;;  %v1404_v47 = vsel %vm1369_vm9, %v1322_v7, %v1324_v62 }
 0x307   : > { %v1393_v61 = vsel %vm1369_vm9, %v1296_v45, %v1298_v49 }
 0x308   : > { %1527 = vmatpush1.bf16.msra.mxu0 %v1408_v24 }
 0x309   : > { %1528 = vmatprep.subr.bf16.mxu0 %v1403_v2  ;;  %v1354_v55 = vpop.permute.xlu0 %1353 }
 0x30a   : > { %v1417_v33 = vsel %vm1369_vm9, %v1352_v51, %v1354_v55  ;;  %v1282_v4 = vpop.permute.xlu1 %1281  ;;  %v1378_v51 = vsel %vm1369_vm9, %v2828_v25, %v1264_v5 }
 0x30b   : > { %1567 = vmatprep.subr.bf16.mxu1 %v1417_v33  ;;  %v1387_v15 = vsel %vm1369_vm9, %v1282_v4, %v2881_v57 }
 0x30c   : > { %1529 = vmatpush1.bf16.msra.mxu0 %v1402_v59  ;;  %1568 = vmatpush1.bf16.msra.mxu1 %v1416_v30 }
 0x30d   : > { %v1308_v31 = vpop.permute.xlu0 %1307 }
 0x30e   : > { %v1397_v32 = vsel %vm1369_vm9, %v1306_v48, %v1308_v31  ;;  %v1399_v48 = vsel %vm1369_vm9, %v1310_v9, %v1312_v23  ;;  %v1398_v46 = vsel %vm1369_vm9, %v1308_v31, %v1310_v9  ;;  %v1268_v10 = vpop.permute.xlu1 %1267 }
 0x30f   : > { %1530 = vmatprep.subr.bf16.mxu0 %v1397_v32 }
 0x310   : > { %1531 = vmatpush1.bf16.msra.mxu0 %v1396_v43 }
 0x311   : > { %v1340_v29 = vpop.permute.xlu0 %1339 }
 0x312   : > { %v1411_v63 = vsel %vm1369_vm9, %v1338_v38, %v1340_v29 }
 0x313   : > { %1569 = vmatprep.subr.bf16.mxu1 %v1411_v63 }
 0x314   : > { %1570 = vmatpush1.bf16.msra.mxu1 %v1410_v37 }
 0x315   : > { %v1294_v20 = vpop.permute.xlu0 %1293 }
 0x316   : > { %v1391_v27 = vsel %vm1369_vm9, %v1292_v19, %v1294_v20  ;;  %v1392_v11 = vsel %vm1369_vm9, %v1294_v20, %v1296_v45  ;;  %v1254_v19 = vpop.permute.xlu1 %1253 }
 0x317   : > { %1532 = vmatprep.subr.bf16.mxu0 %v1391_v27 }
 0x318   : > { %1533 = vmatpush1.bf16.msra.mxu0 %v1390_v36 }
 0x319   : > { %v1326_v13 = vpop.permute.xlu0 %1325 }
 0x31a   : > { %v1405_v40 = vsel %vm1369_vm9, %v1324_v62, %v1326_v13  ;;  %v1374_v62 = vsel %vm1369_vm9, %v2814_v26, %v1254_v19  ;;  %v1366_v44 = vpop.permute.xlu1 %1365  ;;  %v2042_v26 = vld [vmem:[%s3017_s8] sm:$0xff]  }
 0x31b   : > { %1571 = vmatprep.subr.bf16.mxu1 %v1405_v40 }
 0x31c   : > { %1572 = vmatpush1.bf16.msra.mxu1 %v1404_v47 }
 0x31d   : > { %1573 = vmatprep.subr.bf16.mxu1 %v1399_v48  ;;  %v1280_v52 = vpop.permute.xlu0 %1279 }
 0x31e   : > { %v1385_v54 = vsel %vm1369_vm9, %v1278_v0, %v1280_v52  ;;  %v1386_v16 = vsel %vm1369_vm9, %v1280_v52, %v1282_v4 }
 0x31f   : > { %1534 = vmatprep.subr.bf16.mxu0 %v1385_v54 }
 0x320   : > { %1535 = vmatpush1.bf16.msra.mxu0 %v1384_v34  ;;  %1574 = vmatpush1.bf16.msra.mxu1 %v1398_v46 }
 0x321   : > { %1575 = vmatprep.subr.bf16.mxu1 %v1393_v61  ;;  %v1266_v12 = vpop.permute.xlu0 %1265 }
 0x322   : > { %v1379_v50 = vsel %vm1369_vm9, %v1264_v5, %v1266_v12  ;;  %v1380_v23 = vsel %vm1369_vm9, %v1266_v12, %v1268_v10 }
 0x323   : > { %1536 = vmatprep.subr.bf16.mxu0 %v1379_v50 }
 0x324   : > { %1537 = vmatpush1.bf16.msra.mxu0 %v1378_v51  ;;  %1576 = vmatpush1.bf16.msra.mxu1 %v1392_v11 }
 0x325   : > { %1538 = vmatprep.subr.bf16.mxu0 %v1373_v60  ;;  %1577 = vmatprep.subr.bf16.mxu1 %v1387_v15  ;;  %v1270_v38 = vpop.permute.xlu0 %1269 }
 0x326   : > { %v1381_v25 = vsel %vm1369_vm9, %v1268_v10, %v1270_v38 }
 0x328   : > { %1539 = vmatpush1.bf16.msra.mxu0 %v2662_v14  ;;  %1578 = vmatpush1.bf16.msra.mxu1 %v1386_v16 }
 0x329   : > { %1579 = vmatprep.subr.bf16.mxu1 %v1381_v25  ;;  %v1364_v21 = vpop.permute.xlu0 %1363 }
 0x32a   : > { %v1421_v53 = vsel %vm1369_vm9, %v1362_v18, %v1364_v21  ;;  %v1422_v0 = vsel %vm1369_vm9, %v1364_v21, %v1366_v44 }
 0x32b   : > { %1554 = vmatprep.subr.bf16.mxu0 %v1421_v53 }
 0x32c   : > { %1555 = vmatpush2.bf16.msra.mxu0 %v1420_v6  ;;  %1580 = vmatpush1.bf16.msra.mxu1 %v1380_v23 }
 0x32d   : > { %1682 = vmatprep.subr.bf16.mxu0 %v2305_v35  ;;  %v1256_v49 = vpop.permute.xlu0 %1255 }
 0x32e   : > { %v1375_v14 = vsel %vm1369_vm9, %v1254_v19, %v1256_v49 }
 0x32f   : > { %1557 = vmatmul.mubr.bf16.vlgmr.msra.gmra.mxu0 %v2876_v17  ;;  %1581 = vmatprep.subr.bf16.mxu1 %v1375_v14 }
 0x330   : > { %1582 = vmatpush1.bf16.msra.mxu1 %v1374_v62  ;;  %1683 = vmatpush1.bf16.msra.mxu0 %v2313_v39  ;;  %v1615_v39 = vpop.permute.xlu1 %1614 }
 0x331   : > { %1768 = vmatprep.subr.bf16.mxu0 %v2381_v42  ;;  %v1368_v57 = vpop.permute.xlu0 %1367  ;;  %1700 = vmatprep.mubr.bf16.mxu0 %v2065_v8 }
 0x332   : > { %v1423_v35 = vsel %vm1369_vm9, %v1366_v44, %v1368_v57 }
 0x333   : > { %1597 = vmatprep.subr.bf16.mxu1 %v1423_v35 }
 0x334   : > { %1598 = vmatpush2.bf16.msra.mxu1 %v1422_v0  ;;  %v2948_v3 = vpop.permute.xlu1 %1801 }
 0x335   : > { %1725 = vmatprep.subr.bf16.mxu1 %v2329_v56 }
 0x337   : > { %1600 = vmatmul.mubr.bf16.vlgmr.msra.gmra.mxu1 %v2876_v17  ;;  %1993 = vmatmul.mubr.msk.bf16.vlgmr.msra.gmra.mxu0 %vm689_vm0, %v2042_v26 }
 0x338   : > { %1769 = vmatpush1.bf16.msra.mxu0 %v2378_v41  ;;  %1726 = vmatpush1.bf16.msra.mxu1 %v2334_v58  ;;  %v1639_v58 = vpop.permute.xlu1 %1638 }
 0x339   : > { %1743 = vmatprep.mubr.bf16.mxu1 %v2065_v8  ;;  %1786 = vmatprep.mubr.bf16.mxu0 %v2065_v8 }
 0x33c   : > { %v2954_v33 = vpop.permute.xlu1 %1825 }
 0x33e   : > { %v2950_v56 = vpop.permute.xlu0 %1619 }
 0x33f   : > { %1994 = vmatmul.mubr.msk.bf16.vlgmr.msra.gmra.mxu1 %vm689_vm0, %v2042_v26  ;;  %1995 = vmatmul.mubr.msk.bf16.vlgmr.msra.gmra.mxu0 %vm689_vm0, %v2042_v26 }
 0x342   : > { %v2952_v28 = vpop.permute.xlu0 %1806 }
 0x346   : > { %v2956_v59 = vpop.permute.xlu0 %1643 }
 0x34a   : > { %v1831_v12 = vpop.permute.xlu0 %1830 }
 0x3b7   : > { %v1515_v42 = vpop.f32.mrf.mxu1 }
 0x3b8   : > { %v1622_v8 = vmul.f32 %v1615_v39, %v1515_v42 }
 0x3b9   : > { %v1517_v17 = vpop.f32.mrf.mxu1 }
 0x3ba   : > { %v1623_v30 = vmul.f32 %v1615_v39, %v1517_v17  ;;  %v1646_v31 = vadd.f32 %v1639_v58, %v1622_v8 }
 0x3bb   : > { %v1519_v1 = vpop.f32.mrf.mxu1 }
 0x3bc   : > { %v1628_v32 = vmul.f32 %v2950_v56, %v1519_v1  ;;  %v1647_v40 = vadd.f32 %v1639_v58, %v1623_v30 }
 0x3bd   : > { %v1521_v24 = vpop.f32.mrf.mxu1 }
 0x3be   : > { %v1629_v43 = vmul.f32 %v2950_v56, %v1521_v24  ;;  %v1652_v52 = vadd.f32 %v2956_v59, %v1628_v32 }
 0x3c0   : > { %v1653_v54 = vadd.f32 %v2956_v59, %v1629_v43 }
 0x3ef   : > { %v1558_v22 = vpop.f32.mrf.mxu0 }
 0x3f0   : > { %v1624_v37 = vmul.f32 %v1615_v39, %v1558_v22 }
 0x3f1   : > { %v1560_v41 = vpop.f32.mrf.mxu0 }
 0x3f2   : > { %v1625_v18 = vmul.f32 %v1615_v39, %v1560_v41  ;;  %v1648_v50 = vadd.f32 %v1639_v58, %v1624_v37 }
 0x3f3   : > { %v1562_v7 = vpop.f32.mrf.mxu0 }
 0x3f4   : > { %v1630_v36 = vmul.f32 %v2950_v56, %v1562_v7  ;;  %v1649_v51 = vadd.f32 %v1639_v58, %v1625_v18 }
 0x3f5   : > { %v1564_v9 = vpop.f32.mrf.mxu0 }
 0x3f6   : > { %v1654_v15 = vadd.f32 %v2956_v59, %v1630_v36  ;;  %v1631_v53 = vmul.f32 %v2950_v56, %v1564_v9 }
 0x3f7   : > { %v1601_v2 = vpop.f32.mrf.mxu1  ;;  %v1702_v55 = vpop.f32.mrf.mxu0 }
 0x3f8   : > { %v1809_v5 = vmul.f32 %v2948_v3, %v1702_v55  ;;  %v1626_v34 = vmul.f32 %v1615_v39, %v1601_v2 }
 0x3f9   : > { %v1603_v29 = vpop.f32.mrf.mxu1  ;;  %v1704_v63 = vpop.f32.mrf.mxu0 }
 0x3fa   : > { %v1833_v20 = vadd.f32 %v2954_v33, %v1809_v5  ;;  %v1810_v27 = vmul.f32 %v2948_v3, %v1704_v63  ;;  %v1627_v10 = vmul.f32 %v1615_v39, %v1603_v29  ;;  %v1650_v49 = vadd.f32 %v1639_v58, %v1626_v34 }
 0x3fb   : > { %v1605_v45 = vpop.f32.mrf.mxu1  ;;  %v1706_v13 = vpop.f32.mrf.mxu0 }
 0x3fc   : > { %v1845_v47 = vadd.f32 %v1833_v20, %v1646_v31  ;;  %v1834_v48 = vadd.f32 %v2954_v33, %v1810_v27  ;;  %v1815_v4 = vmul.f32 %v2952_v28, %v1706_v13  ;;  %v1632_v14 = vmul.f32 %v2950_v56, %v1605_v45 }
 0x3fd   : > { %v1607_v46 = vpop.f32.mrf.mxu1  ;;  %v1708_v61 = vpop.f32.mrf.mxu0  ;;  %v1651_v17 = vadd.f32 %v1639_v58, %v1627_v10  ;;  %v1655_v27 = vadd.f32 %v2956_v59, %v1631_v53 }
 0x3fe   : > { %v1857_v11 = vmax.f32 %v1845_v47, 0.0  ;;  %v1846_v60 = vadd.f32 %v1834_v48, %v1647_v40  ;;  %v1839_v38 = vadd.f32 %v1831_v12, %v1815_v4  ;;  %v1816_v16 = vmul.f32 %v2952_v28, %v1708_v61 }
 0x3ff   : > { %v1745_v25 = vpop.f32.mrf.mxu1  ;;  %v1788_v21 = vpop.f32.mrf.mxu0  ;;  %v1633_v1 = vmul.f32 %v2950_v56, %v1607_v46  ;;  %v1656_v30 = vadd.f32 %v2956_v59, %v1632_v14 }
 0x400   : > { %1869 = vst [vmem:[%s2971_s13] sm:$0xff] %v1857_v11  ;;  %v1858_v6 = vmax.f32 %v1846_v60, 0.0  ;;  %v1811_v19 = vmul.f32 %v2948_v3, %v1745_v25  ;;  %v1813_v23 = vmul.f32 %v2948_v3, %v1788_v21  ;;  %v1851_v62 = vadd.f32 %v1839_v38, %v1652_v52 }
 0x401   : > { %v1840_v44 = vadd.f32 %v1831_v12, %v1816_v16  ;;  %v1747_v57 = vpop.f32.mrf.mxu1  ;;  %v1790_v35 = vpop.f32.mrf.mxu0  ;;  %v1657_v36 = vadd.f32 %v2956_v59, %v1633_v1 }
 0x402   : > { %1870 = vst [vmem:[%s2971_s13 + $0x8] sm:$0xff] %v1858_v6  ;;  %v1835_v0 = vadd.f32 %v2954_v33, %v1811_v19  ;;  %v1837_v26 = vadd.f32 %v2954_v33, %v1813_v23  ;;  %v1812_v39 = vmul.f32 %v2948_v3, %v1747_v57  ;;  %v1814_v42 = vmul.f32 %v2948_v3, %v1790_v35 }
 0x403   : > { %v1863_v22 = vmax.f32 %v1851_v62, 0.0  ;;  %v1852_v41 = vadd.f32 %v1840_v44, %v1653_v54  ;;  %v1749_v7 = vpop.f32.mrf.mxu1  ;;  %v1792_v8 = vpop.f32.mrf.mxu0 }
 0x404   : > { %v1847_v24 = vadd.f32 %v1835_v0, %v1648_v50  ;;  %v1849_v9 = vadd.f32 %v1837_v26, %v1650_v49  ;;  %v1836_v2 = vadd.f32 %v2954_v33, %v1812_v39  ;;  %v1838_v55 = vadd.f32 %v2954_v33, %v1814_v42 }
 0x405   : > { %1875 = vst [vmem:[%s2971_s13 + $0x30] sm:$0xff] %v1863_v22  ;;  %v1864_v5 = vmax.f32 %v1852_v41, 0.0  ;;  %v1817_v3 = vmul.f32 %v2952_v28, %v1749_v7  ;;  %v1819_v56 = vmul.f32 %v2952_v28, %v1792_v8  ;;  %v1751_v58 = vpop.f32.mrf.mxu1  ;;  %v1794_v31 = vpop.f32.mrf.mxu0 }
 0x406   : > { %v1859_v32 = vmax.f32 %v1847_v24, 0.0  ;;  %v1861_v43 = vmax.f32 %v1849_v9, 0.0  ;;  %v1848_v29 = vadd.f32 %v1836_v2, %v1649_v51  ;;  %v1850_v63 = vadd.f32 %v1838_v55, %v1651_v17 }
 0x407   : > { %1876 = vst [vmem:[%s2971_s13 + $0x38] sm:$0xff] %v1864_v5  ;;  %v1841_v33 = vadd.f32 %v1831_v12, %v1817_v3  ;;  %v1843_v37 = vadd.f32 %v1831_v12, %v1819_v56  ;;  %v1818_v18 = vmul.f32 %v2952_v28, %v1751_v58  ;;  %v1820_v20 = vmul.f32 %v2952_v28, %v1794_v31 }
 0x408   : > { %1871 = vst [vmem:[%s2971_s13 + $0x10] sm:$0xff] %v1859_v32  ;;  %1873 = vst [vmem:[%s2971_s13 + $0x20] sm:$0xff] %v1861_v43  ;;  %v1860_v45 = vmax.f32 %v1848_v29, 0.0  ;;  %v1862_v13 = vmax.f32 %v1850_v63, 0.0 }
 0x409   : > { %v1853_v40 = vadd.f32 %v1841_v33, %v1654_v15  ;;  %v1855_v47 = vadd.f32 %v1843_v37, %v1656_v30  ;;  %v1842_v48 = vadd.f32 %v1831_v12, %v1818_v18  ;;  %v1844_v52 = vadd.f32 %v1831_v12, %v1820_v20 }
 0x40a   : > { %1872 = vst [vmem:[%s2971_s13 + $0x18] sm:$0xff] %v1860_v45  ;;  %1874 = vst [vmem:[%s2971_s13 + $0x28] sm:$0xff] %v1862_v13 }
 0x40b   : > { %v1865_v54 = vmax.f32 %v1853_v40, 0.0  ;;  %v1867_v28 = vmax.f32 %v1855_v47, 0.0  ;;  %v1854_v34 = vadd.f32 %v1842_v48, %v1655_v27  ;;  %v1856_v4 = vadd.f32 %v1844_v52, %v1657_v36 }
 0x40d   : > { %1877 = vst [vmem:[%s2971_s13 + $0x40] sm:$0xff] %v1865_v54  ;;  %1879 = vst [vmem:[%s2971_s13 + $0x50] sm:$0xff] %v1867_v28  ;;  %v1866_v59 = vmax.f32 %v1854_v34, 0.0  ;;  %v1868_v46 = vmax.f32 %v1856_v4, 0.0 }
 0x40f   : > { %1878 = vst [vmem:[%s2971_s13 + $0x48] sm:$0xff] %v1866_v59  ;;  %1880 = vst [vmem:[%s2971_s13 + $0x58] sm:$0xff] %v1868_v46 }
 0x410 PF: > { %s21_s17 = sadd.s32 1, %s2055_s17  }
 0x411   : > { %p18_p4 = scmp.ge.s32.totalorder %s21_s17, 6  }
 0x413   :  { %20 = sbr.rel (!%p18_p4) target bundleno = 1 (0x1), region = 94 }

</bundles_post_ra>
